<compile_context>
chip_gen: v5e
topology: v5e:2x2
jax: 0.10.0
libtpu: 0.0.40
codegen_flags: <defaults>
</compile_context>

<pallas_src>
import math
import functools

import jax
import jax.numpy as jnp
from jax.experimental import pallas as pl
from jax.experimental.pallas import tpu as pltpu

# ----------------------------- config (small, synthetic) -----------------------------
B = 2          # batch
T = 8          # sequence length
C = 32         # n_embd
N_HEAD = 4     # n_head
HEAD_DIM = C // N_HEAD
LN_EPS = 1e-5


# ----------------------------- helpers -----------------------------
def _layernorm(h, g, b):
    mu = jnp.mean(h, axis=-1, keepdims=True)
    var = jnp.mean((h - mu) ** 2, axis=-1, keepdims=True)
    return (h - mu) * jax.lax.rsqrt(var + LN_EPS) * g + b


def _gelu_tanh(x):
    return 0.5 * x * (1.0 + jnp.tanh(0.7978845608028654 * (x + 0.044715 * x * x * x)))


# ----------------------------- Pallas kernel -----------------------------
def block_kernel(x_ref,
                 ln1_g_ref, ln1_b_ref,
                 wq_ref, bq_ref,            # (H, C, D) bf16 (scale folded), (H, 1, D) f32
                 wk_ref, bk_ref,
                 wv_ref, bv_ref,
                 w_aproj_ref, b_aproj_ref,  # (H, D, C) bf16, (1, C) f32
                 ln2_g_ref, ln2_b_ref,
                 w_fc_ref, b_fc_ref,        # (C, 4C) bf16, (1, 4C) f32
                 w_mproj_ref, b_mproj_ref,  # (4C, C) bf16, (1, C) f32
                 o_ref,
                 *, batch, n_head):
    rows, embd = x_ref.shape            # (B*T, C)
    seq_len = rows // batch
    head_dim = embd // n_head

    x = x_ref[...]                                       # (B*T, C) f32

    # ---- ln_1 (f32), single bf16 cast of the normalized activations ----
    h1 = _layernorm(x, ln1_g_ref[0], ln1_b_ref[0])
    h1b = h1.astype(jnp.bfloat16)

    # Causal mask built once (B, T, T); finite fill avoids -inf - -inf NaNs.
    row_idx = jax.lax.broadcasted_iota(jnp.int32, (batch, seq_len, seq_len), 1)
    col_idx = jax.lax.broadcasted_iota(jnp.int32, (batch, seq_len, seq_len), 2)
    causal = row_idx >= col_idx
    neg_big = jnp.float32(-1e30)

    # ---- causal self-attention ----
    # Per-head weights are pre-split outside the kernel, so there are no lane
    # slices here: each head is 3 matmuls + 2 batched einsums on full vregs,
    # and its output feeds the attention projection directly from registers
    # (projection accumulated across heads) -- no VMEM scratch, no concatenate.
    y = None                                             # (B*T, C) f32 accumulator (vregs)
    for h in range(n_head):
        q = (jnp.dot(h1b, wq_ref[h], preferred_element_type=jnp.float32)
             + bq_ref[h]).reshape(batch, seq_len, head_dim)        # scale pre-folded
        k = (jnp.dot(h1b, wk_ref[h], preferred_element_type=jnp.float32)
             + bk_ref[h]).reshape(batch, seq_len, head_dim)
        v = (jnp.dot(h1b, wv_ref[h], preferred_element_type=jnp.float32)
             + bv_ref[h]).reshape(batch, seq_len, head_dim)

        s = jnp.einsum("bqd,bkd->bqk",
                       q.astype(jnp.bfloat16), k.astype(jnp.bfloat16),
                       preferred_element_type=jnp.float32)          # (B, T, T) f32
        s = jnp.where(causal, s, neg_big)
        s = s - jnp.max(s, axis=-1, keepdims=True)
        p = jnp.exp(s)
        p = p * pl.reciprocal(jnp.sum(p, axis=-1, keepdims=True))   # exact path (EUP)

        yh = jnp.einsum("bqk,bkd->bqd",
                        p.astype(jnp.bfloat16), v.astype(jnp.bfloat16),
                        preferred_element_type=jnp.float32)         # (B, T, D)

        # Attention projection, accumulated per head: vregs -> MXU directly.
        contrib = jnp.dot(yh.reshape(rows, head_dim).astype(jnp.bfloat16),
                          w_aproj_ref[h], preferred_element_type=jnp.float32)
        y = contrib if y is None else y + contrib

    x1 = x + y + b_aproj_ref[0]                          # first residual (f32)

    # ---- ln_2 + MLP ----
    h2 = _layernorm(x1, ln2_g_ref[0], ln2_b_ref[0])
    ff = jnp.dot(h2.astype(jnp.bfloat16), w_fc_ref[...],
                 preferred_element_type=jnp.float32) + b_fc_ref[0]  # (B*T, 4C), lane-dense
    ff = _gelu_tanh(ff)
    ff = jnp.dot(ff.astype(jnp.bfloat16), w_mproj_ref[...],
                 preferred_element_type=jnp.float32) + b_mproj_ref[0]

    # C=32 < 128 -> masked store at the toy shape; lane-dense automatically
    # once C is a multiple of 128 (see header notes).
    o_ref[...] = x1 + ff                                 # second residual (f32)


# ----------------------------- one-time parameter preparation -----------------------------
def prepare_params(params, *, n_head=N_HEAD):
    """One-time (per model) re-blocking + bf16 cast of the weights.

    - Q/K/V weights/biases split per head: (C, C) -> (H, C, D), (1, C) -> (H, 1, D)
    - 1/sqrt(head_dim) folded into the Q weights/bias.
    - Attention projection re-blocked per head: (C, C) -> (H, D, C).
    - Matmul weights cast to bf16 once; biases / LayerNorm params stay f32.
    """
    embd = params["w_attn"].shape[0]
    head_dim = embd // n_head
    scale = 1.0 / math.sqrt(head_dim)

    def split_heads_w(w):                       # (C, C) -> (H, C, D)
        return jnp.transpose(w.reshape(embd, n_head, head_dim), (1, 0, 2))

    def split_heads_b(b):                       # (1, C) -> (H, 1, D)
        return jnp.transpose(b.reshape(1, n_head, head_dim), (1, 0, 2))

    w_attn, b_attn = params["w_attn"], params["b_attn"]
    w_q, w_k, w_v = w_attn[:, :embd], w_attn[:, embd:2 * embd], w_attn[:, 2 * embd:]
    b_q, b_k, b_v = b_attn[:, :embd], b_attn[:, embd:2 * embd], b_attn[:, 2 * embd:]

    return {
        "ln1_g": params["ln1_g"], "ln1_b": params["ln1_b"],
        "w_q": split_heads_w(w_q * scale).astype(jnp.bfloat16),
        "b_q": split_heads_b(b_q * scale),
        "w_k": split_heads_w(w_k).astype(jnp.bfloat16),
        "b_k": split_heads_b(b_k),
        "w_v": split_heads_w(w_v).astype(jnp.bfloat16),
        "b_v": split_heads_b(b_v),
        "w_aproj": params["w_aproj"].reshape(n_head, head_dim, embd).astype(jnp.bfloat16),
        "b_aproj": params["b_aproj"],
        "ln2_g": params["ln2_g"], "ln2_b": params["ln2_b"],
        "w_fc": params["w_fc"].astype(jnp.bfloat16), "b_fc": params["b_fc"],
        "w_mproj": params["w_mproj"].astype(jnp.bfloat16), "b_mproj": params["b_mproj"],
    }


# ----------------------------- wrapper -----------------------------
def gpt2_block(x, prep, *, n_head=N_HEAD):
    """x: (B, T, C) float32.  prep: output of prepare_params()."""
    batch, seq_len, embd = x.shape
    rows = batch * seq_len
    head_dim = embd // n_head
    x2d = x.reshape(rows, embd)                 # flatten batch in the wrapper

    args = (x2d,
            prep["ln1_g"], prep["ln1_b"],
            prep["w_q"], prep["b_q"],
            prep["w_k"], prep["b_k"],
            prep["w_v"], prep["b_v"],
            prep["w_aproj"], prep["b_aproj"],
            prep["ln2_g"], prep["ln2_b"],
            prep["w_fc"], prep["b_fc"],
            prep["w_mproj"], prep["b_mproj"])

    flops = int(2 * rows * embd * 3 * embd                      # QKV projections
                + 4 * batch * n_head * seq_len * seq_len * head_dim  # scores + p@v
                + 2 * rows * embd * embd                        # attn output proj
                + 2 * rows * embd * 4 * embd                    # fc
                + 2 * rows * 4 * embd * embd)                   # mlp proj
    transcendentals = int(batch * n_head * seq_len * seq_len    # softmax exp
                          + rows * 4 * embd                     # gelu tanh
                          + 2 * rows)                           # layernorm rsqrt
    bytes_accessed = int(sum(a.size * a.dtype.itemsize for a in args)
                         + rows * embd * 4)                     # + output

    vmem = functools.partial(pl.BlockSpec, memory_space=pltpu.MemorySpace.VMEM)
    kernel = functools.partial(block_kernel, batch=batch, n_head=n_head)

    out2d = pl.pallas_call(
        kernel,
        out_shape=jax.ShapeDtypeStruct((rows, embd), jnp.float32),
        in_specs=[vmem() for _ in range(len(args))],
        out_specs=vmem(),
        # Single invocation (no grid): everything fits in VMEM at this toy
        # size.  On v7x, add a 'parallel' grid axis over row blocks + K-tiled
        # weights before scaling (see header notes).
        compiler_params=pltpu.CompilerParams(vmem_limit_bytes=32 * 1024 * 1024),
        cost_estimate=pl.CostEstimate(flops=flops,
                                      transcendentals=transcendentals,
                                      bytes_accessed=bytes_accessed),
    )(*args)
    return out2d.reshape(batch, seq_len, embd)


# ----------------------------- pure-JAX f32 reference -----------------------------
def gpt2_block_ref(x, params, *, n_head=N_HEAD):
    def ln(h, g, b):
        mu = jnp.mean(h, axis=-1, keepdims=True)
        var = jnp.mean((h - mu) ** 2, axis=-1, keepdims=True)
        return (h - mu) * jax.lax.rsqrt(var + LN_EPS) * g + b

    batch, seq_len, embd = x.shape
    head_dim = embd // n_head

    h = ln(x, params["ln1_g"][0], params["ln1_b"][0])
    qkv = h @ params["w_attn"] + params["b_attn"][0]
    q, k, v = jnp.split(qkv, 3, axis=-1)
    q = q.reshape(batch, seq_len, n_head, head_dim).transpose(0, 2, 1, 3)
    k = k.reshape(batch, seq_len, n_head, head_dim).transpose(0, 2, 1, 3)
    v = v.reshape(batch, seq_len, n_head, head_dim).transpose(0, 2, 1, 3)
    s = jnp.einsum("bhqd,bhkd->bhqk", q, k) / math.sqrt(head_dim)
    mask = jnp.tril(jnp.ones((seq_len, seq_len), dtype=bool))
    s = jnp.where(mask, s, -jnp.inf)
    p = jax.nn.softmax(s, axis=-1)
    y = jnp.einsum("bhqk,bhkd->bhqd", p, v)
    y = y.transpose(0, 2, 1, 3).reshape(batch, seq_len, embd)
    y = y @ params["w_aproj"] + params["b_aproj"][0]
    x1 = x + y

    h2 = ln(x1, params["ln2_g"][0], params["ln2_b"][0])
    ff = h2 @ params["w_fc"] + params["b_fc"][0]
    ff = 0.5 * ff * (1.0 + jnp.tanh(0.7978845608028654 * (ff + 0.044715 * ff ** 3)))
    ff = ff @ params["w_mproj"] + params["b_mproj"][0]
    return x1 + ff


# ----------------------------- deterministic parameter init -----------------------------
def init_params(key, embd):
    ks = jax.random.split(key, 6)
    s = 0.02
    return {
        "ln1_g": jnp.ones((1, embd), jnp.float32),
        "ln1_b": jnp.zeros((1, embd), jnp.float32),
        "w_attn": s * jax.random.normal(ks[0], (embd, 3 * embd), jnp.float32),
        "b_attn": s * jax.random.normal(ks[1], (1, 3 * embd), jnp.float32),
        "w_aproj": s * jax.random.normal(ks[2], (embd, embd), jnp.float32),
        "b_aproj": jnp.zeros((1, embd), jnp.float32),
        "ln2_g": jnp.ones((1, embd), jnp.float32),
        "ln2_b": jnp.zeros((1, embd), jnp.float32),
        "w_fc": s * jax.random.normal(ks[3], (embd, 4 * embd), jnp.float32),
        "b_fc": s * jax.random.normal(ks[4], (1, 4 * embd), jnp.float32),
        "w_mproj": s * jax.random.normal(ks[5], (4 * embd, embd), jnp.float32),
        "b_mproj": jnp.zeros((1, embd), jnp.float32),
    }


if __name__ == "__main__":
    key = jax.random.PRNGKey(0)
    kx, kp = jax.random.split(key)
    x = jax.random.normal(kx, (B, T, C), jnp.float32)
    params = init_params(kp, C)

    # One-time weight preparation (bf16 cast + per-head re-blocking) -- NOT
    # repeated per forward call (review item 9).
    prep = jax.tree_util.tree_map(jax.block_until_ready, prepare_params(params))

    out = jax.block_until_ready(gpt2_block(x, prep))
    ref = jax.block_until_ready(gpt2_block_ref(x, params))

    assert out.shape == (B, T, C)
    err = float(jnp.max(jnp.abs(out - ref)))
    # Tolerance relaxed vs. the pure-f32 reference because the kernel feeds
    # the matmuls bf16 inputs (with f32 accumulation); this is the dominant
    # error source, not a bug margin.  Observed error is well below this.
    assert err < 1e-2, f"max abs err {err}"

    print("KERNEL_OK")
</pallas_src>

<mosaic_0001>
module attributes {stable_mosaic.version = 11 : i64} {
  func.func @block_kernel(%arg0: memref<16x32xf32, #tpu.memory_space<vmem>>, %arg1: memref<1x32xf32, #tpu.memory_space<vmem>>, %arg2: memref<1x32xf32, #tpu.memory_space<vmem>>, %arg3: memref<4x32x8xbf16, #tpu.memory_space<vmem>>, %arg4: memref<4x1x8xf32, #tpu.memory_space<vmem>>, %arg5: memref<4x32x8xbf16, #tpu.memory_space<vmem>>, %arg6: memref<4x1x8xf32, #tpu.memory_space<vmem>>, %arg7: memref<4x32x8xbf16, #tpu.memory_space<vmem>>, %arg8: memref<4x1x8xf32, #tpu.memory_space<vmem>>, %arg9: memref<4x8x32xbf16, #tpu.memory_space<vmem>>, %arg10: memref<1x32xf32, #tpu.memory_space<vmem>>, %arg11: memref<1x32xf32, #tpu.memory_space<vmem>>, %arg12: memref<1x32xf32, #tpu.memory_space<vmem>>, %arg13: memref<32x128xbf16, #tpu.memory_space<vmem>>, %arg14: memref<1x128xf32, #tpu.memory_space<vmem>>, %arg15: memref<128x32xbf16, #tpu.memory_space<vmem>>, %arg16: memref<1x32xf32, #tpu.memory_space<vmem>>, %arg17: memref<16x32xf32, #tpu.memory_space<vmem>>) attributes {dimension_semantics = [], scalar_prefetch = 0 : i64, scratch_operands = 0 : i64, tpu.core_type = #tpu.core_type<tc>} {
    %c0 = arith.constant 0 : index
    %c0_0 = arith.constant 0 : index
    %0 = vector.load %arg0[%c0, %c0_0] : memref<16x32xf32, #tpu.memory_space<vmem>>, vector<16x32xf32>
    %c0_1 = arith.constant 0 : index
    %c0_2 = arith.constant 0 : index
    %1 = vector.load %arg1[%c0_1, %c0_2] : memref<1x32xf32, #tpu.memory_space<vmem>>, vector<1x32xf32>
    %2 = vector.shape_cast %1 : vector<1x32xf32> to vector<32xf32>
    %c0_3 = arith.constant 0 : index
    %c0_4 = arith.constant 0 : index
    %3 = vector.load %arg2[%c0_3, %c0_4] : memref<1x32xf32, #tpu.memory_space<vmem>>, vector<1x32xf32>
    %4 = vector.shape_cast %3 : vector<1x32xf32> to vector<32xf32>
    %cst = arith.constant dense<0.000000e+00> : vector<16xf32>
    %5 = vector.multi_reduction <add>, %0, %cst [1] : vector<16x32xf32> to vector<16xf32>
    %6 = vector.shape_cast %5 : vector<16xf32> to vector<16x1xf32>
    %cst_5 = arith.constant 3.200000e+01 : f32
    %7 = vector.broadcast %cst_5 : f32 to vector<16x1xf32>
    %8 = arith.divf %6, %7 : vector<16x1xf32>
    %9 = vector.broadcast %8 : vector<16x1xf32> to vector<16x32xf32>
    %10 = arith.subf %0, %9 : vector<16x32xf32>
    %11 = arith.mulf %10, %10 : vector<16x32xf32>
    %cst_6 = arith.constant dense<0.000000e+00> : vector<16xf32>
    %12 = vector.multi_reduction <add>, %11, %cst_6 [1] : vector<16x32xf32> to vector<16xf32>
    %13 = vector.shape_cast %12 : vector<16xf32> to vector<16x1xf32>
    %cst_7 = arith.constant 3.200000e+01 : f32
    %14 = vector.broadcast %cst_7 : f32 to vector<16x1xf32>
    %15 = arith.divf %13, %14 : vector<16x1xf32>
    %16 = vector.broadcast %8 : vector<16x1xf32> to vector<16x32xf32>
    %17 = arith.subf %0, %16 : vector<16x32xf32>
    %cst_8 = arith.constant 9.99999974E-6 : f32
    %18 = vector.broadcast %cst_8 : f32 to vector<16x1xf32>
    %19 = arith.addf %15, %18 : vector<16x1xf32>
    %20 = math.rsqrt %19 : vector<16x1xf32>
    %21 = vector.broadcast %20 : vector<16x1xf32> to vector<16x32xf32>
    %22 = arith.mulf %17, %21 : vector<16x32xf32>
    %23 = vector.shape_cast %2 : vector<32xf32> to vector<1x32xf32>
    %24 = vector.broadcast %23 : vector<1x32xf32> to vector<16x32xf32>
    %25 = arith.mulf %22, %24 : vector<16x32xf32>
    %26 = vector.shape_cast %4 : vector<32xf32> to vector<1x32xf32>
    %27 = vector.broadcast %26 : vector<1x32xf32> to vector<16x32xf32>
    %28 = arith.addf %25, %27 : vector<16x32xf32>
    %29 = arith.truncf %28 : vector<16x32xf32> to vector<16x32xbf16>
    %30 = tpu.iota {dimensions = array<i32: 1>} : vector<2x8x8xi32>
    %31 = tpu.iota {dimensions = array<i32: 2>} : vector<2x8x8xi32>
    %32 = arith.cmpi sge, %30, %31 : vector<2x8x8xi32>
    %c0_9 = arith.constant 0 : index
    %c0_10 = arith.constant 0 : index
    %c0_11 = arith.constant 0 : index
    %33 = vector.load %arg3[%c0_9, %c0_10, %c0_11] : memref<4x32x8xbf16, #tpu.memory_space<vmem>>, vector<1x32x8xbf16>
    %34 = vector.shape_cast %33 : vector<1x32x8xbf16> to vector<32x8xbf16>
    %cst_12 = arith.constant dense<0.000000e+00> : vector<16x8xf32>
    %35 = tpu.matmul %29, %34, %cst_12 {dimension_numbers = #tpu.dot_dimension_numbers<[1], [0], [0], [1], [0, 0, 1, 1], [], []>} : vector<16x32xbf16>, vector<32x8xbf16>, vector<16x8xf32> -> vector<16x8xf32>
    %c0_13 = arith.constant 0 : index
    %c0_14 = arith.constant 0 : index
    %c0_15 = arith.constant 0 : index
    %36 = vector.load %arg4[%c0_13, %c0_14, %c0_15] : memref<4x1x8xf32, #tpu.memory_space<vmem>>, vector<1x1x8xf32>
    %37 = vector.shape_cast %36 : vector<1x1x8xf32> to vector<1x8xf32>
    %38 = vector.broadcast %37 : vector<1x8xf32> to vector<16x8xf32>
    %39 = arith.addf %35, %38 : vector<16x8xf32>
    %40 = vector.shape_cast %39 : vector<16x8xf32> to vector<2x8x8xf32>
    %c0_16 = arith.constant 0 : index
    %c0_17 = arith.constant 0 : index
    %c0_18 = arith.constant 0 : index
    %41 = vector.load %arg5[%c0_16, %c0_17, %c0_18] : memref<4x32x8xbf16, #tpu.memory_space<vmem>>, vector<1x32x8xbf16>
    %42 = vector.shape_cast %41 : vector<1x32x8xbf16> to vector<32x8xbf16>
    %cst_19 = arith.constant dense<0.000000e+00> : vector<16x8xf32>
    %43 = tpu.matmul %29, %42, %cst_19 {dimension_numbers = #tpu.dot_dimension_numbers<[1], [0], [0], [1], [0, 0, 1, 1], [], []>} : vector<16x32xbf16>, vector<32x8xbf16>, vector<16x8xf32> -> vector<16x8xf32>
    %c0_20 = arith.constant 0 : index
    %c0_21 = arith.constant 0 : index
    %c0_22 = arith.constant 0 : index
    %44 = vector.load %arg6[%c0_20, %c0_21, %c0_22] : memref<4x1x8xf32, #tpu.memory_space<vmem>>, vector<1x1x8xf32>
    %45 = vector.shape_cast %44 : vector<1x1x8xf32> to vector<1x8xf32>
    %46 = vector.broadcast %45 : vector<1x8xf32> to vector<16x8xf32>
    %47 = arith.addf %43, %46 : vector<16x8xf32>
    %48 = vector.shape_cast %47 : vector<16x8xf32> to vector<2x8x8xf32>
    %c0_23 = arith.constant 0 : index
    %c0_24 = arith.constant 0 : index
    %c0_25 = arith.constant 0 : index
    %49 = vector.load %arg7[%c0_23, %c0_24, %c0_25] : memref<4x32x8xbf16, #tpu.memory_space<vmem>>, vector<1x32x8xbf16>
    %50 = vector.shape_cast %49 : vector<1x32x8xbf16> to vector<32x8xbf16>
    %cst_26 = arith.constant dense<0.000000e+00> : vector<16x8xf32>
    %51 = tpu.matmul %29, %50, %cst_26 {dimension_numbers = #tpu.dot_dimension_numbers<[1], [0], [0], [1], [0, 0, 1, 1], [], []>} : vector<16x32xbf16>, vector<32x8xbf16>, vector<16x8xf32> -> vector<16x8xf32>
    %c0_27 = arith.constant 0 : index
    %c0_28 = arith.constant 0 : index
    %c0_29 = arith.constant 0 : index
    %52 = vector.load %arg8[%c0_27, %c0_28, %c0_29] : memref<4x1x8xf32, #tpu.memory_space<vmem>>, vector<1x1x8xf32>
    %53 = vector.shape_cast %52 : vector<1x1x8xf32> to vector<1x8xf32>
    %54 = vector.broadcast %53 : vector<1x8xf32> to vector<16x8xf32>
    %55 = arith.addf %51, %54 : vector<16x8xf32>
    %56 = vector.shape_cast %55 : vector<16x8xf32> to vector<2x8x8xf32>
    %57 = arith.truncf %40 : vector<2x8x8xf32> to vector<2x8x8xbf16>
    %58 = arith.truncf %48 : vector<2x8x8xf32> to vector<2x8x8xbf16>
    "tpu.trace_start"() <{level = 10 : i32, message = "bqd,bkd->bqk"}> : () -> ()
    %cst_30 = arith.constant dense<0.000000e+00> : vector<2x8x8xf32>
    %59 = tpu.matmul %57, %58, %cst_30 {dimension_numbers = #tpu.dot_dimension_numbers<[2], [2], [1], [1], [0, 0, 0, 1, 1, 1], [0], [0]>} : vector<2x8x8xbf16>, vector<2x8x8xbf16>, vector<2x8x8xf32> -> vector<2x8x8xf32>
    %cst_31 = arith.constant -1.000000e+30 : f32
    "tpu.trace_stop"() : () -> ()
    %60 = vector.broadcast %cst_31 : f32 to vector<2x8x8xf32>
    %61 = arith.select %32, %59, %60 : vector<2x8x8xi1>, vector<2x8x8xf32>
    %cst_32 = arith.constant dense<0xFF800000> : vector<2x8xf32>
    %62 = vector.multi_reduction <maximumf>, %61, %cst_32 [2] : vector<2x8x8xf32> to vector<2x8xf32>
    %63 = vector.shape_cast %62 : vector<2x8xf32> to vector<2x8x1xf32>
    %64 = vector.broadcast %63 : vector<2x8x1xf32> to vector<2x8x8xf32>
    %65 = arith.subf %61, %64 : vector<2x8x8xf32>
    %66 = math.exp %65 : vector<2x8x8xf32>
    %cst_33 = arith.constant dense<0.000000e+00> : vector<2x8xf32>
    %67 = vector.multi_reduction <add>, %66, %cst_33 [2] : vector<2x8x8xf32> to vector<2x8xf32>
    %68 = vector.shape_cast %67 : vector<2x8xf32> to vector<2x8x1xf32>
    %69 = tpu.reciprocal %68 : vector<2x8x1xf32> -> vector<2x8x1xf32>
    %70 = vector.broadcast %69 : vector<2x8x1xf32> to vector<2x8x8xf32>
    %71 = arith.mulf %66, %70 : vector<2x8x8xf32>
    %72 = arith.truncf %71 : vector<2x8x8xf32> to vector<2x8x8xbf16>
    %73 = arith.truncf %56 : vector<2x8x8xf32> to vector<2x8x8xbf16>
    "tpu.trace_start"() <{level = 10 : i32, message = "bqk,bkd->bqd"}> : () -> ()
    %cst_34 = arith.constant dense<0.000000e+00> : vector<2x8x8xf32>
    %74 = tpu.matmul %72, %73, %cst_34 {dimension_numbers = #tpu.dot_dimension_numbers<[2], [1], [1], [2], [0, 0, 0, 1, 1, 2], [0], [0]>} : vector<2x8x8xbf16>, vector<2x8x8xbf16>, vector<2x8x8xf32> -> vector<2x8x8xf32>
    "tpu.trace_stop"() : () -> ()
    %75 = vector.shape_cast %74 : vector<2x8x8xf32> to vector<16x8xf32>
    %76 = arith.truncf %75 : vector<16x8xf32> to vector<16x8xbf16>
    %c0_35 = arith.constant 0 : index
    %c0_36 = arith.constant 0 : index
    %c0_37 = arith.constant 0 : index
    %77 = vector.load %arg9[%c0_35, %c0_36, %c0_37] : memref<4x8x32xbf16, #tpu.memory_space<vmem>>, vector<1x8x32xbf16>
    %78 = vector.shape_cast %77 : vector<1x8x32xbf16> to vector<8x32xbf16>
    %cst_38 = arith.constant dense<0.000000e+00> : vector<16x32xf32>
    %79 = tpu.matmul %76, %78, %cst_38 {dimension_numbers = #tpu.dot_dimension_numbers<[1], [0], [0], [1], [0, 0, 1, 1], [], []>} : vector<16x8xbf16>, vector<8x32xbf16>, vector<16x32xf32> -> vector<16x32xf32>
    %c1 = arith.constant 1 : index
    %c0_39 = arith.constant 0 : index
    %c0_40 = arith.constant 0 : index
    %80 = vector.load %arg3[%c1, %c0_39, %c0_40] : memref<4x32x8xbf16, #tpu.memory_space<vmem>>, vector<1x32x8xbf16>
    %81 = vector.shape_cast %80 : vector<1x32x8xbf16> to vector<32x8xbf16>
    %cst_41 = arith.constant dense<0.000000e+00> : vector<16x8xf32>
    %82 = tpu.matmul %29, %81, %cst_41 {dimension_numbers = #tpu.dot_dimension_numbers<[1], [0], [0], [1], [0, 0, 1, 1], [], []>} : vector<16x32xbf16>, vector<32x8xbf16>, vector<16x8xf32> -> vector<16x8xf32>
    %c1_42 = arith.constant 1 : index
    %c0_43 = arith.constant 0 : index
    %c0_44 = arith.constant 0 : index
    %83 = vector.load %arg4[%c1_42, %c0_43, %c0_44] : memref<4x1x8xf32, #tpu.memory_space<vmem>>, vector<1x1x8xf32>
    %84 = vector.shape_cast %83 : vector<1x1x8xf32> to vector<1x8xf32>
    %85 = vector.broadcast %84 : vector<1x8xf32> to vector<16x8xf32>
    %86 = arith.addf %82, %85 : vector<16x8xf32>
    %87 = vector.shape_cast %86 : vector<16x8xf32> to vector<2x8x8xf32>
    %c1_45 = arith.constant 1 : index
    %c0_46 = arith.constant 0 : index
    %c0_47 = arith.constant 0 : index
    %88 = vector.load %arg5[%c1_45, %c0_46, %c0_47] : memref<4x32x8xbf16, #tpu.memory_space<vmem>>, vector<1x32x8xbf16>
    %89 = vector.shape_cast %88 : vector<1x32x8xbf16> to vector<32x8xbf16>
    %cst_48 = arith.constant dense<0.000000e+00> : vector<16x8xf32>
    %90 = tpu.matmul %29, %89, %cst_48 {dimension_numbers = #tpu.dot_dimension_numbers<[1], [0], [0], [1], [0, 0, 1, 1], [], []>} : vector<16x32xbf16>, vector<32x8xbf16>, vector<16x8xf32> -> vector<16x8xf32>
    %c1_49 = arith.constant 1 : index
    %c0_50 = arith.constant 0 : index
    %c0_51 = arith.constant 0 : index
    %91 = vector.load %arg6[%c1_49, %c0_50, %c0_51] : memref<4x1x8xf32, #tpu.memory_space<vmem>>, vector<1x1x8xf32>
    %92 = vector.shape_cast %91 : vector<1x1x8xf32> to vector<1x8xf32>
    %93 = vector.broadcast %92 : vector<1x8xf32> to vector<16x8xf32>
    %94 = arith.addf %90, %93 : vector<16x8xf32>
    %95 = vector.shape_cast %94 : vector<16x8xf32> to vector<2x8x8xf32>
    %c1_52 = arith.constant 1 : index
    %c0_53 = arith.constant 0 : index
    %c0_54 = arith.constant 0 : index
    %96 = vector.load %arg7[%c1_52, %c0_53, %c0_54] : memref<4x32x8xbf16, #tpu.memory_space<vmem>>, vector<1x32x8xbf16>
    %97 = vector.shape_cast %96 : vector<1x32x8xbf16> to vector<32x8xbf16>
    %cst_55 = arith.constant dense<0.000000e+00> : vector<16x8xf32>
    %98 = tpu.matmul %29, %97, %cst_55 {dimension_numbers = #tpu.dot_dimension_numbers<[1], [0], [0], [1], [0, 0, 1, 1], [], []>} : vector<16x32xbf16>, vector<32x8xbf16>, vector<16x8xf32> -> vector<16x8xf32>
    %c1_56 = arith.constant 1 : index
    %c0_57 = arith.constant 0 : index
    %c0_58 = arith.constant 0 : index
    %99 = vector.load %arg8[%c1_56, %c0_57, %c0_58] : memref<4x1x8xf32, #tpu.memory_space<vmem>>, vector<1x1x8xf32>
    %100 = vector.shape_cast %99 : vector<1x1x8xf32> to vector<1x8xf32>
    %101 = vector.broadcast %100 : vector<1x8xf32> to vector<16x8xf32>
    %102 = arith.addf %98, %101 : vector<16x8xf32>
    %103 = vector.shape_cast %102 : vector<16x8xf32> to vector<2x8x8xf32>
    %104 = arith.truncf %87 : vector<2x8x8xf32> to vector<2x8x8xbf16>
    %105 = arith.truncf %95 : vector<2x8x8xf32> to vector<2x8x8xbf16>
    "tpu.trace_start"() <{level = 10 : i32, message = "bqd,bkd->bqk"}> : () -> ()
    %cst_59 = arith.constant dense<0.000000e+00> : vector<2x8x8xf32>
    %106 = tpu.matmul %104, %105, %cst_59 {dimension_numbers = #tpu.dot_dimension_numbers<[2], [2], [1], [1], [0, 0, 0, 1, 1, 1], [0], [0]>} : vector<2x8x8xbf16>, vector<2x8x8xbf16>, vector<2x8x8xf32> -> vector<2x8x8xf32>
    %cst_60 = arith.constant -1.000000e+30 : f32
    "tpu.trace_stop"() : () -> ()
    %107 = vector.broadcast %cst_60 : f32 to vector<2x8x8xf32>
    %108 = arith.select %32, %106, %107 : vector<2x8x8xi1>, vector<2x8x8xf32>
    %cst_61 = arith.constant dense<0xFF800000> : vector<2x8xf32>
    %109 = vector.multi_reduction <maximumf>, %108, %cst_61 [2] : vector<2x8x8xf32> to vector<2x8xf32>
    %110 = vector.shape_cast %109 : vector<2x8xf32> to vector<2x8x1xf32>
    %111 = vector.broadcast %110 : vector<2x8x1xf32> to vector<2x8x8xf32>
    %112 = arith.subf %108, %111 : vector<2x8x8xf32>
    %113 = math.exp %112 : vector<2x8x8xf32>
    %cst_62 = arith.constant dense<0.000000e+00> : vector<2x8xf32>
    %114 = vector.multi_reduction <add>, %113, %cst_62 [2] : vector<2x8x8xf32> to vector<2x8xf32>
    %115 = vector.shape_cast %114 : vector<2x8xf32> to vector<2x8x1xf32>
    %116 = tpu.reciprocal %115 : vector<2x8x1xf32> -> vector<2x8x1xf32>
    %117 = vector.broadcast %116 : vector<2x8x1xf32> to vector<2x8x8xf32>
    %118 = arith.mulf %113, %117 : vector<2x8x8xf32>
    %119 = arith.truncf %118 : vector<2x8x8xf32> to vector<2x8x8xbf16>
    %120 = arith.truncf %103 : vector<2x8x8xf32> to vector<2x8x8xbf16>
    "tpu.trace_start"() <{level = 10 : i32, message = "bqk,bkd->bqd"}> : () -> ()
    %cst_63 = arith.constant dense<0.000000e+00> : vector<2x8x8xf32>
    %121 = tpu.matmul %119, %120, %cst_63 {dimension_numbers = #tpu.dot_dimension_numbers<[2], [1], [1], [2], [0, 0, 0, 1, 1, 2], [0], [0]>} : vector<2x8x8xbf16>, vector<2x8x8xbf16>, vector<2x8x8xf32> -> vector<2x8x8xf32>
    "tpu.trace_stop"() : () -> ()
    %122 = vector.shape_cast %121 : vector<2x8x8xf32> to vector<16x8xf32>
    %123 = arith.truncf %122 : vector<16x8xf32> to vector<16x8xbf16>
    %c1_64 = arith.constant 1 : index
    %c0_65 = arith.constant 0 : index
    %c0_66 = arith.constant 0 : index
    %124 = vector.load %arg9[%c1_64, %c0_65, %c0_66] : memref<4x8x32xbf16, #tpu.memory_space<vmem>>, vector<1x8x32xbf16>
    %125 = vector.shape_cast %124 : vector<1x8x32xbf16> to vector<8x32xbf16>
    %cst_67 = arith.constant dense<0.000000e+00> : vector<16x32xf32>
    %126 = tpu.matmul %123, %125, %cst_67 {dimension_numbers = #tpu.dot_dimension_numbers<[1], [0], [0], [1], [0, 0, 1, 1], [], []>} : vector<16x8xbf16>, vector<8x32xbf16>, vector<16x32xf32> -> vector<16x32xf32>
    %127 = arith.addf %79, %126 : vector<16x32xf32>
    %c2 = arith.constant 2 : index
    %c0_68 = arith.constant 0 : index
    %c0_69 = arith.constant 0 : index
    %128 = vector.load %arg3[%c2, %c0_68, %c0_69] : memref<4x32x8xbf16, #tpu.memory_space<vmem>>, vector<1x32x8xbf16>
    %129 = vector.shape_cast %128 : vector<1x32x8xbf16> to vector<32x8xbf16>
    %cst_70 = arith.constant dense<0.000000e+00> : vector<16x8xf32>
    %130 = tpu.matmul %29, %129, %cst_70 {dimension_numbers = #tpu.dot_dimension_numbers<[1], [0], [0], [1], [0, 0, 1, 1], [], []>} : vector<16x32xbf16>, vector<32x8xbf16>, vector<16x8xf32> -> vector<16x8xf32>
    %c2_71 = arith.constant 2 : index
    %c0_72 = arith.constant 0 : index
    %c0_73 = arith.constant 0 : index
    %131 = vector.load %arg4[%c2_71, %c0_72, %c0_73] : memref<4x1x8xf32, #tpu.memory_space<vmem>>, vector<1x1x8xf32>
    %132 = vector.shape_cast %131 : vector<1x1x8xf32> to vector<1x8xf32>
    %133 = vector.broadcast %132 : vector<1x8xf32> to vector<16x8xf32>
    %134 = arith.addf %130, %133 : vector<16x8xf32>
    %135 = vector.shape_cast %134 : vector<16x8xf32> to vector<2x8x8xf32>
    %c2_74 = arith.constant 2 : index
    %c0_75 = arith.constant 0 : index
    %c0_76 = arith.constant 0 : index
    %136 = vector.load %arg5[%c2_74, %c0_75, %c0_76] : memref<4x32x8xbf16, #tpu.memory_space<vmem>>, vector<1x32x8xbf16>
    %137 = vector.shape_cast %136 : vector<1x32x8xbf16> to vector<32x8xbf16>
    %cst_77 = arith.constant dense<0.000000e+00> : vector<16x8xf32>
    %138 = tpu.matmul %29, %137, %cst_77 {dimension_numbers = #tpu.dot_dimension_numbers<[1], [0], [0], [1], [0, 0, 1, 1], [], []>} : vector<16x32xbf16>, vector<32x8xbf16>, vector<16x8xf32> -> vector<16x8xf32>
    %c2_78 = arith.constant 2 : index
    %c0_79 = arith.constant 0 : index
    %c0_80 = arith.constant 0 : index
    %139 = vector.load %arg6[%c2_78, %c0_79, %c0_80] : memref<4x1x8xf32, #tpu.memory_space<vmem>>, vector<1x1x8xf32>
    %140 = vector.shape_cast %139 : vector<1x1x8xf32> to vector<1x8xf32>
    %141 = vector.broadcast %140 : vector<1x8xf32> to vector<16x8xf32>
    %142 = arith.addf %138, %141 : vector<16x8xf32>
    %143 = vector.shape_cast %142 : vector<16x8xf32> to vector<2x8x8xf32>
    %c2_81 = arith.constant 2 : index
    %c0_82 = arith.constant 0 : index
    %c0_83 = arith.constant 0 : index
    %144 = vector.load %arg7[%c2_81, %c0_82, %c0_83] : memref<4x32x8xbf16, #tpu.memory_space<vmem>>, vector<1x32x8xbf16>
    %145 = vector.shape_cast %144 : vector<1x32x8xbf16> to vector<32x8xbf16>
    %cst_84 = arith.constant dense<0.000000e+00> : vector<16x8xf32>
    %146 = tpu.matmul %29, %145, %cst_84 {dimension_numbers = #tpu.dot_dimension_numbers<[1], [0], [0], [1], [0, 0, 1, 1], [], []>} : vector<16x32xbf16>, vector<32x8xbf16>, vector<16x8xf32> -> vector<16x8xf32>
    %c2_85 = arith.constant 2 : index
    %c0_86 = arith.constant 0 : index
    %c0_87 = arith.constant 0 : index
    %147 = vector.load %arg8[%c2_85, %c0_86, %c0_87] : memref<4x1x8xf32, #tpu.memory_space<vmem>>, vector<1x1x8xf32>
    %148 = vector.shape_cast %147 : vector<1x1x8xf32> to vector<1x8xf32>
    %149 = vector.broadcast %148 : vector<1x8xf32> to vector<16x8xf32>
    %150 = arith.addf %146, %149 : vector<16x8xf32>
    %151 = vector.shape_cast %150 : vector<16x8xf32> to vector<2x8x8xf32>
    %152 = arith.truncf %135 : vector<2x8x8xf32> to vector<2x8x8xbf16>
    %153 = arith.truncf %143 : vector<2x8x8xf32> to vector<2x8x8xbf16>
    "tpu.trace_start"() <{level = 10 : i32, message = "bqd,bkd->bqk"}> : () -> ()
    %cst_88 = arith.constant dense<0.000000e+00> : vector<2x8x8xf32>
    %154 = tpu.matmul %152, %153, %cst_88 {dimension_numbers = #tpu.dot_dimension_numbers<[2], [2], [1], [1], [0, 0, 0, 1, 1, 1], [0], [0]>} : vector<2x8x8xbf16>, vector<2x8x8xbf16>, vector<2x8x8xf32> -> vector<2x8x8xf32>
    %cst_89 = arith.constant -1.000000e+30 : f32
    "tpu.trace_stop"() : () -> ()
    %155 = vector.broadcast %cst_89 : f32 to vector<2x8x8xf32>
    %156 = arith.select %32, %154, %155 : vector<2x8x8xi1>, vector<2x8x8xf32>
    %cst_90 = arith.constant dense<0xFF800000> : vector<2x8xf32>
    %157 = vector.multi_reduction <maximumf>, %156, %cst_90 [2] : vector<2x8x8xf32> to vector<2x8xf32>
    %158 = vector.shape_cast %157 : vector<2x8xf32> to vector<2x8x1xf32>
    %159 = vector.broadcast %158 : vector<2x8x1xf32> to vector<2x8x8xf32>
    %160 = arith.subf %156, %159 : vector<2x8x8xf32>
    %161 = math.exp %160 : vector<2x8x8xf32>
    %cst_91 = arith.constant dense<0.000000e+00> : vector<2x8xf32>
    %162 = vector.multi_reduction <add>, %161, %cst_91 [2] : vector<2x8x8xf32> to vector<2x8xf32>
    %163 = vector.shape_cast %162 : vector<2x8xf32> to vector<2x8x1xf32>
    %164 = tpu.reciprocal %163 : vector<2x8x1xf32> -> vector<2x8x1xf32>
    %165 = vector.broadcast %164 : vector<2x8x1xf32> to vector<2x8x8xf32>
    %166 = arith.mulf %161, %165 : vector<2x8x8xf32>
    %167 = arith.truncf %166 : vector<2x8x8xf32> to vector<2x8x8xbf16>
    %168 = arith.truncf %151 : vector<2x8x8xf32> to vector<2x8x8xbf16>
    "tpu.trace_start"() <{level = 10 : i32, message = "bqk,bkd->bqd"}> : () -> ()
    %cst_92 = arith.constant dense<0.000000e+00> : vector<2x8x8xf32>
    %169 = tpu.matmul %167, %168, %cst_92 {dimension_numbers = #tpu.dot_dimension_numbers<[2], [1], [1], [2], [0, 0, 0, 1, 1, 2], [0], [0]>} : vector<2x8x8xbf16>, vector<2x8x8xbf16>, vector<2x8x8xf32> -> vector<2x8x8xf32>
    "tpu.trace_stop"() : () -> ()
    %170 = vector.shape_cast %169 : vector<2x8x8xf32> to vector<16x8xf32>
    %171 = arith.truncf %170 : vector<16x8xf32> to vector<16x8xbf16>
    %c2_93 = arith.constant 2 : index
    %c0_94 = arith.constant 0 : index
    %c0_95 = arith.constant 0 : index
    %172 = vector.load %arg9[%c2_93, %c0_94, %c0_95] : memref<4x8x32xbf16, #tpu.memory_space<vmem>>, vector<1x8x32xbf16>
    %173 = vector.shape_cast %172 : vector<1x8x32xbf16> to vector<8x32xbf16>
    %cst_96 = arith.constant dense<0.000000e+00> : vector<16x32xf32>
    %174 = tpu.matmul %171, %173, %cst_96 {dimension_numbers = #tpu.dot_dimension_numbers<[1], [0], [0], [1], [0, 0, 1, 1], [], []>} : vector<16x8xbf16>, vector<8x32xbf16>, vector<16x32xf32> -> vector<16x32xf32>
    %175 = arith.addf %127, %174 : vector<16x32xf32>
    %c3 = arith.constant 3 : index
    %c0_97 = arith.constant 0 : index
    %c0_98 = arith.constant 0 : index
    %176 = vector.load %arg3[%c3, %c0_97, %c0_98] : memref<4x32x8xbf16, #tpu.memory_space<vmem>>, vector<1x32x8xbf16>
    %177 = vector.shape_cast %176 : vector<1x32x8xbf16> to vector<32x8xbf16>
    %cst_99 = arith.constant dense<0.000000e+00> : vector<16x8xf32>
    %178 = tpu.matmul %29, %177, %cst_99 {dimension_numbers = #tpu.dot_dimension_numbers<[1], [0], [0], [1], [0, 0, 1, 1], [], []>} : vector<16x32xbf16>, vector<32x8xbf16>, vector<16x8xf32> -> vector<16x8xf32>
    %c3_100 = arith.constant 3 : index
    %c0_101 = arith.constant 0 : index
    %c0_102 = arith.constant 0 : index
    %179 = vector.load %arg4[%c3_100, %c0_101, %c0_102] : memref<4x1x8xf32, #tpu.memory_space<vmem>>, vector<1x1x8xf32>
    %180 = vector.shape_cast %179 : vector<1x1x8xf32> to vector<1x8xf32>
    %181 = vector.broadcast %180 : vector<1x8xf32> to vector<16x8xf32>
    %182 = arith.addf %178, %181 : vector<16x8xf32>
    %183 = vector.shape_cast %182 : vector<16x8xf32> to vector<2x8x8xf32>
    %c3_103 = arith.constant 3 : index
    %c0_104 = arith.constant 0 : index
    %c0_105 = arith.constant 0 : index
    %184 = vector.load %arg5[%c3_103, %c0_104, %c0_105] : memref<4x32x8xbf16, #tpu.memory_space<vmem>>, vector<1x32x8xbf16>
    %185 = vector.shape_cast %184 : vector<1x32x8xbf16> to vector<32x8xbf16>
    %cst_106 = arith.constant dense<0.000000e+00> : vector<16x8xf32>
    %186 = tpu.matmul %29, %185, %cst_106 {dimension_numbers = #tpu.dot_dimension_numbers<[1], [0], [0], [1], [0, 0, 1, 1], [], []>} : vector<16x32xbf16>, vector<32x8xbf16>, vector<16x8xf32> -> vector<16x8xf32>
    %c3_107 = arith.constant 3 : index
    %c0_108 = arith.constant 0 : index
    %c0_109 = arith.constant 0 : index
    %187 = vector.load %arg6[%c3_107, %c0_108, %c0_109] : memref<4x1x8xf32, #tpu.memory_space<vmem>>, vector<1x1x8xf32>
    %188 = vector.shape_cast %187 : vector<1x1x8xf32> to vector<1x8xf32>
    %189 = vector.broadcast %188 : vector<1x8xf32> to vector<16x8xf32>
    %190 = arith.addf %186, %189 : vector<16x8xf32>
    %191 = vector.shape_cast %190 : vector<16x8xf32> to vector<2x8x8xf32>
    %c3_110 = arith.constant 3 : index
    %c0_111 = arith.constant 0 : index
    %c0_112 = arith.constant 0 : index
    %192 = vector.load %arg7[%c3_110, %c0_111, %c0_112] : memref<4x32x8xbf16, #tpu.memory_space<vmem>>, vector<1x32x8xbf16>
    %193 = vector.shape_cast %192 : vector<1x32x8xbf16> to vector<32x8xbf16>
    %cst_113 = arith.constant dense<0.000000e+00> : vector<16x8xf32>
    %194 = tpu.matmul %29, %193, %cst_113 {dimension_numbers = #tpu.dot_dimension_numbers<[1], [0], [0], [1], [0, 0, 1, 1], [], []>} : vector<16x32xbf16>, vector<32x8xbf16>, vector<16x8xf32> -> vector<16x8xf32>
    %c3_114 = arith.constant 3 : index
    %c0_115 = arith.constant 0 : index
    %c0_116 = arith.constant 0 : index
    %195 = vector.load %arg8[%c3_114, %c0_115, %c0_116] : memref<4x1x8xf32, #tpu.memory_space<vmem>>, vector<1x1x8xf32>
    %196 = vector.shape_cast %195 : vector<1x1x8xf32> to vector<1x8xf32>
    %197 = vector.broadcast %196 : vector<1x8xf32> to vector<16x8xf32>
    %198 = arith.addf %194, %197 : vector<16x8xf32>
    %199 = vector.shape_cast %198 : vector<16x8xf32> to vector<2x8x8xf32>
    %200 = arith.truncf %183 : vector<2x8x8xf32> to vector<2x8x8xbf16>
    %201 = arith.truncf %191 : vector<2x8x8xf32> to vector<2x8x8xbf16>
    "tpu.trace_start"() <{level = 10 : i32, message = "bqd,bkd->bqk"}> : () -> ()
    %cst_117 = arith.constant dense<0.000000e+00> : vector<2x8x8xf32>
    %202 = tpu.matmul %200, %201, %cst_117 {dimension_numbers = #tpu.dot_dimension_numbers<[2], [2], [1], [1], [0, 0, 0, 1, 1, 1], [0], [0]>} : vector<2x8x8xbf16>, vector<2x8x8xbf16>, vector<2x8x8xf32> -> vector<2x8x8xf32>
    %cst_118 = arith.constant -1.000000e+30 : f32
    "tpu.trace_stop"() : () -> ()
    %203 = vector.broadcast %cst_118 : f32 to vector<2x8x8xf32>
    %204 = arith.select %32, %202, %203 : vector<2x8x8xi1>, vector<2x8x8xf32>
    %cst_119 = arith.constant dense<0xFF800000> : vector<2x8xf32>
    %205 = vector.multi_reduction <maximumf>, %204, %cst_119 [2] : vector<2x8x8xf32> to vector<2x8xf32>
    %206 = vector.shape_cast %205 : vector<2x8xf32> to vector<2x8x1xf32>
    %207 = vector.broadcast %206 : vector<2x8x1xf32> to vector<2x8x8xf32>
    %208 = arith.subf %204, %207 : vector<2x8x8xf32>
    %209 = math.exp %208 : vector<2x8x8xf32>
    %cst_120 = arith.constant dense<0.000000e+00> : vector<2x8xf32>
    %210 = vector.multi_reduction <add>, %209, %cst_120 [2] : vector<2x8x8xf32> to vector<2x8xf32>
    %211 = vector.shape_cast %210 : vector<2x8xf32> to vector<2x8x1xf32>
    %212 = tpu.reciprocal %211 : vector<2x8x1xf32> -> vector<2x8x1xf32>
    %213 = vector.broadcast %212 : vector<2x8x1xf32> to vector<2x8x8xf32>
    %214 = arith.mulf %209, %213 : vector<2x8x8xf32>
    %215 = arith.truncf %214 : vector<2x8x8xf32> to vector<2x8x8xbf16>
    %216 = arith.truncf %199 : vector<2x8x8xf32> to vector<2x8x8xbf16>
    "tpu.trace_start"() <{level = 10 : i32, message = "bqk,bkd->bqd"}> : () -> ()
    %cst_121 = arith.constant dense<0.000000e+00> : vector<2x8x8xf32>
    %217 = tpu.matmul %215, %216, %cst_121 {dimension_numbers = #tpu.dot_dimension_numbers<[2], [1], [1], [2], [0, 0, 0, 1, 1, 2], [0], [0]>} : vector<2x8x8xbf16>, vector<2x8x8xbf16>, vector<2x8x8xf32> -> vector<2x8x8xf32>
    "tpu.trace_stop"() : () -> ()
    %218 = vector.shape_cast %217 : vector<2x8x8xf32> to vector<16x8xf32>
    %219 = arith.truncf %218 : vector<16x8xf32> to vector<16x8xbf16>
    %c3_122 = arith.constant 3 : index
    %c0_123 = arith.constant 0 : index
    %c0_124 = arith.constant 0 : index
    %220 = vector.load %arg9[%c3_122, %c0_123, %c0_124] : memref<4x8x32xbf16, #tpu.memory_space<vmem>>, vector<1x8x32xbf16>
    %221 = vector.shape_cast %220 : vector<1x8x32xbf16> to vector<8x32xbf16>
    %cst_125 = arith.constant dense<0.000000e+00> : vector<16x32xf32>
    %222 = tpu.matmul %219, %221, %cst_125 {dimension_numbers = #tpu.dot_dimension_numbers<[1], [0], [0], [1], [0, 0, 1, 1], [], []>} : vector<16x8xbf16>, vector<8x32xbf16>, vector<16x32xf32> -> vector<16x32xf32>
    %223 = arith.addf %175, %222 : vector<16x32xf32>
    %224 = arith.addf %0, %223 : vector<16x32xf32>
    %c0_126 = arith.constant 0 : index
    %c0_127 = arith.constant 0 : index
    %225 = vector.load %arg10[%c0_126, %c0_127] : memref<1x32xf32, #tpu.memory_space<vmem>>, vector<1x32xf32>
    %226 = vector.shape_cast %225 : vector<1x32xf32> to vector<32xf32>
    %227 = vector.shape_cast %226 : vector<32xf32> to vector<1x32xf32>
    %228 = vector.broadcast %227 : vector<1x32xf32> to vector<16x32xf32>
    %229 = arith.addf %224, %228 : vector<16x32xf32>
    %c0_128 = arith.constant 0 : index
    %c0_129 = arith.constant 0 : index
    %230 = vector.load %arg11[%c0_128, %c0_129] : memref<1x32xf32, #tpu.memory_space<vmem>>, vector<1x32xf32>
    %231 = vector.shape_cast %230 : vector<1x32xf32> to vector<32xf32>
    %c0_130 = arith.constant 0 : index
    %c0_131 = arith.constant 0 : index
    %232 = vector.load %arg12[%c0_130, %c0_131] : memref<1x32xf32, #tpu.memory_space<vmem>>, vector<1x32xf32>
    %233 = vector.shape_cast %232 : vector<1x32xf32> to vector<32xf32>
    %cst_132 = arith.constant dense<0.000000e+00> : vector<16xf32>
    %234 = vector.multi_reduction <add>, %229, %cst_132 [1] : vector<16x32xf32> to vector<16xf32>
    %235 = vector.shape_cast %234 : vector<16xf32> to vector<16x1xf32>
    %cst_133 = arith.constant 3.200000e+01 : f32
    %236 = vector.broadcast %cst_133 : f32 to vector<16x1xf32>
    %237 = arith.divf %235, %236 : vector<16x1xf32>
    %238 = vector.broadcast %237 : vector<16x1xf32> to vector<16x32xf32>
    %239 = arith.subf %229, %238 : vector<16x32xf32>
    %240 = arith.mulf %239, %239 : vector<16x32xf32>
    %cst_134 = arith.constant dense<0.000000e+00> : vector<16xf32>
    %241 = vector.multi_reduction <add>, %240, %cst_134 [1] : vector<16x32xf32> to vector<16xf32>
    %242 = vector.shape_cast %241 : vector<16xf32> to vector<16x1xf32>
    %cst_135 = arith.constant 3.200000e+01 : f32
    %243 = vector.broadcast %cst_135 : f32 to vector<16x1xf32>
    %244 = arith.divf %242, %243 : vector<16x1xf32>
    %245 = vector.broadcast %237 : vector<16x1xf32> to vector<16x32xf32>
    %246 = arith.subf %229, %245 : vector<16x32xf32>
    %cst_136 = arith.constant 9.99999974E-6 : f32
    %247 = vector.broadcast %cst_136 : f32 to vector<16x1xf32>
    %248 = arith.addf %244, %247 : vector<16x1xf32>
    %249 = math.rsqrt %248 : vector<16x1xf32>
    %250 = vector.broadcast %249 : vector<16x1xf32> to vector<16x32xf32>
    %251 = arith.mulf %246, %250 : vector<16x32xf32>
    %252 = vector.shape_cast %231 : vector<32xf32> to vector<1x32xf32>
    %253 = vector.broadcast %252 : vector<1x32xf32> to vector<16x32xf32>
    %254 = arith.mulf %251, %253 : vector<16x32xf32>
    %255 = vector.shape_cast %233 : vector<32xf32> to vector<1x32xf32>
    %256 = vector.broadcast %255 : vector<1x32xf32> to vector<16x32xf32>
    %257 = arith.addf %254, %256 : vector<16x32xf32>
    %258 = arith.truncf %257 : vector<16x32xf32> to vector<16x32xbf16>
    %c0_137 = arith.constant 0 : index
    %c0_138 = arith.constant 0 : index
    %259 = vector.load %arg13[%c0_137, %c0_138] : memref<32x128xbf16, #tpu.memory_space<vmem>>, vector<32x128xbf16>
    %cst_139 = arith.constant dense<0.000000e+00> : vector<16x128xf32>
    %260 = tpu.matmul %258, %259, %cst_139 {dimension_numbers = #tpu.dot_dimension_numbers<[1], [0], [0], [1], [0, 0, 1, 1], [], []>} : vector<16x32xbf16>, vector<32x128xbf16>, vector<16x128xf32> -> vector<16x128xf32>
    %c0_140 = arith.constant 0 : index
    %c0_141 = arith.constant 0 : index
    %261 = vector.load %arg14[%c0_140, %c0_141] : memref<1x128xf32, #tpu.memory_space<vmem>>, vector<1x128xf32>
    %262 = vector.shape_cast %261 : vector<1x128xf32> to vector<128xf32>
    %263 = vector.shape_cast %262 : vector<128xf32> to vector<1x128xf32>
    %264 = vector.broadcast %263 : vector<1x128xf32> to vector<16x128xf32>
    %265 = arith.addf %260, %264 : vector<16x128xf32>
    %cst_142 = arith.constant 5.000000e-01 : f32
    %266 = vector.broadcast %cst_142 : f32 to vector<16x128xf32>
    %267 = arith.mulf %266, %265 : vector<16x128xf32>
    %cst_143 = arith.constant 4.471500e-02 : f32
    %268 = vector.broadcast %cst_143 : f32 to vector<16x128xf32>
    %269 = arith.mulf %268, %265 : vector<16x128xf32>
    %270 = arith.mulf %269, %265 : vector<16x128xf32>
    %271 = arith.mulf %270, %265 : vector<16x128xf32>
    %272 = arith.addf %265, %271 : vector<16x128xf32>
    %cst_144 = arith.constant 0.797884583 : f32
    %273 = vector.broadcast %cst_144 : f32 to vector<16x128xf32>
    %274 = arith.mulf %273, %272 : vector<16x128xf32>
    %275 = math.tanh %274 : vector<16x128xf32>
    %cst_145 = arith.constant 1.000000e+00 : f32
    %276 = vector.broadcast %cst_145 : f32 to vector<16x128xf32>
    %277 = arith.addf %276, %275 : vector<16x128xf32>
    %278 = arith.mulf %267, %277 : vector<16x128xf32>
    %279 = arith.truncf %278 : vector<16x128xf32> to vector<16x128xbf16>
    %c0_146 = arith.constant 0 : index
    %c0_147 = arith.constant 0 : index
    %280 = vector.load %arg15[%c0_146, %c0_147] : memref<128x32xbf16, #tpu.memory_space<vmem>>, vector<128x32xbf16>
    %cst_148 = arith.constant dense<0.000000e+00> : vector<16x32xf32>
    %281 = tpu.matmul %279, %280, %cst_148 {dimension_numbers = #tpu.dot_dimension_numbers<[1], [0], [0], [1], [0, 0, 1, 1], [], []>} : vector<16x128xbf16>, vector<128x32xbf16>, vector<16x32xf32> -> vector<16x32xf32>
    %c0_149 = arith.constant 0 : index
    %c0_150 = arith.constant 0 : index
    %282 = vector.load %arg16[%c0_149, %c0_150] : memref<1x32xf32, #tpu.memory_space<vmem>>, vector<1x32xf32>
    %283 = vector.shape_cast %282 : vector<1x32xf32> to vector<32xf32>
    %284 = vector.shape_cast %283 : vector<32xf32> to vector<1x32xf32>
    %285 = vector.broadcast %284 : vector<1x32xf32> to vector<16x32xf32>
    %286 = arith.addf %281, %285 : vector<16x32xf32>
    %287 = arith.addf %229, %286 : vector<16x32xf32>
    %c0_151 = arith.constant 0 : index
    %c0_152 = arith.constant 0 : index
    %288 = vector.load %arg17[%c0_151, %c0_152] : memref<16x32xf32, #tpu.memory_space<vmem>>, vector<16x32xf32>
    tpu.vector_store %arg17[%c0_151, %c0_152], %287 {strides = array<i32>} : memref<16x32xf32, #tpu.memory_space<vmem>>, vector<16x32xf32>,
    return
  }
}

</mosaic_0001>

<bundles_post_ra>
// kernel: tpu_custom_call.1
= control target key start
LH: loop header
LB: loop body
LE: loop exit
PB: predicated region body
PF: predicated region fallthrough
CT: control target
= control target key end

     0   :  { %s2197_s0 = inlined_call_operand.vmem [shape: f32[16,32], index: 0, kind: input, shape index: {}]   ;;  %s2198_s1 = inlined_call_operand.vmem [shape: f32[1,32], index: 1, kind: input, shape index: {}]   ;;  %s2199_s2 = inlined_call_operand.vmem [shape: f32[1,32], index: 2, kind: input, shape index: {}]   ;;  %s2200_s3 = inlined_call_operand.vmem [shape: bf16[4,32,8], index: 3, kind: input, shape index: {}]   ;;  %s2201_s4 = inlined_call_operand.vmem [shape: f32[4,1,8], index: 4, kind: input, shape index: {}]   ;;  %s2202_s5 = inlined_call_operand.vmem [shape: bf16[4,32,8], index: 5, kind: input, shape index: {}]   ;;  %s2203_s6 = inlined_call_operand.vmem [shape: f32[4,1,8], index: 6, kind: input, shape index: {}]   ;;  %s2204_s7 = inlined_call_operand.vmem [shape: bf16[4,32,8], index: 7, kind: input, shape index: {}]   ;;  %s2205_s8 = inlined_call_operand.vmem [shape: f32[4,1,8], index: 8, kind: input, shape index: {}]   ;;  %s2206_s9 = inlined_call_operand.vmem [shape: bf16[4,8,32], index: 9, kind: input, shape index: {}]   ;;  %s2207_s10 = inlined_call_operand.vmem [shape: f32[1,32], index: 10, kind: input, shape index: {}]   ;;  %s2208_s11 = inlined_call_operand.vmem [shape: f32[1,32], index: 11, kind: input, shape index: {}]   ;;  %s2209_s12 = inlined_call_operand.vmem [shape: f32[1,32], index: 12, kind: input, shape index: {}]   ;;  %s2210_s13 = inlined_call_operand.vmem [shape: bf16[32,128], index: 13, kind: input, shape index: {}]   ;;  %s2211_s14 = inlined_call_operand.vmem [shape: f32[1,128], index: 14, kind: input, shape index: {}]   ;;  %s2212_s15 = inlined_call_operand.vmem [shape: bf16[128,32], index: 15, kind: input, shape index: {}]   ;;  %s2213_s16 = inlined_call_operand.vmem [shape: f32[1,32], index: 16, kind: input, shape index: {}]   ;;  %s2214_s17 = inlined_call_operand.hbm [shape: f32[16,32], index: 17, kind: output, shape index: {}]  }
   0x1   :  { %2216 = sst [smem:[#allocation5_spill]] %s2197_s0 }
   0x2   :  { %2217 = sst [smem:[#allocation6_spill]] %s2198_s1 }
   0x3   :  { %s2218_s26 = sld [smem:[#allocation5_spill]]  ;;  %vm62_vm0 = vcmask 261120  }
   0x9   :  { %v58_v0 = vld [vmem:[%s2218_s26] sm:$0xff]  ;;  %v59_v2 = vld [vmem:[%s2218_s26 + $0x8] sm:$0xff] }
   0xa   :  { %v63_v1 = vsel %vm62_vm0, %v58_v0, 0.0  ;;  %v66_v3 = vsel %vm62_vm0, %v59_v2, 0.0 }
   0xb   :  { %64 = vadd.xlane.f32.xlu0 %v63_v1 }
   0xc   :  { %22 = vsyncpa [#allocation3], 0  ;;  %v1765_v4 = vmov 32.0   ;;  %v1635_v21 = vld [vmem:[%s2200_s3 + $0x8] sm:$0xff]  ;;  %v1634_v25 = vld [vmem:[%s2200_s3] sm:$0xff]  ;;  %s2219_s29 = sld [smem:[#allocation6_spill]] }
   0xd   :  { %1691 = vrcp.f32 %v1765_v4  ;;  %v1637_v22 = vld [vmem:[%s2202_s5 + $0x8] sm:$0xff]  ;;  %159 = vmatpush.bf16.msra.mxu0 %v1635_v21  ;;  %v1636_v26 = vld [vmem:[%s2202_s5] sm:$0xff]  ;;  %vm239_vm8 = vcmask 64512   ;;  %v1641_v62 = vld [vmem:[%s2200_s3 + $0x18] sm:$0xff]  ;;  %vm335_vm9 = vcmask 1043456   ;;  %s1766_s21 = smov [#allocation2]  }
   0xe   :  { %193 = vmatpush.bf16.msra.mxu2 %v1637_v22  ;;  %v1639_v28 = vld [vmem:[%s2204_s7 + $0x8] sm:$0xff]  ;;  %v1638_v31 = vld [vmem:[%s2204_s7] sm:$0xff]  ;;  %v1640_v1 = vld [vmem:[%s2200_s3 + $0x10] sm:$0xff]  ;;  %v125_v22 = vlaneseq  ;;  %s1405_s23 = sshll.u32 %s2214_s17, 4  ;;  %s1406_s23 = int_to_ptr.hbm [resolvable:$true] %s1405_s23 }
   0xf   :  { %v1673_v49 = vld [vmem:[%s2199_s2] ss:$0 sm:$0xff] }
  0x10   :  { %v1675_v56 = vld [vmem:[%s2203_s6] ss:$0 sm:$0xff] }
  0x11   :  { %160 = vmatpush.bf16.msra.mxu0 %v1634_v25  ;;  %v1674_v60 = vld [vmem:[%s2201_s4] ss:$0 sm:$0xff] }
  0x12   :  { %194 = vmatpush.bf16.msra.mxu2 %v1636_v26  ;;  %v1672_v45 = vld [vmem:[%s2219_s29] ss:$0 sm:$0xff] }
  0x13   :  { %67 = vadd.xlane.f32.xlu0 %v66_v3  ;;  %v1692_v5 = vpop.eup %1691 }
  0x14   :  { %v70_v6 = vmul.f32 32.0, %v1692_v5  ;;  %vm74_vm1 = vweird.f32 %v1692_v5 }
  0x16   :  { %v71_v7 = vsub.f32 1.0, %v70_v6  ;;  %227 = vmatpush.bf16.msrb.mxu2 %v1639_v28  ;;  %v1643_v6 = vld [vmem:[%s2202_s5 + $0x18] sm:$0xff] }
  0x18   :  { %v72_v8 = vmul.f32 %v1692_v5, %v71_v7 }
  0x1a   :  { %v73_v9 = vadd.f32 %v1692_v5, %v72_v8  ;;  %228 = vmatpush.bf16.msrb.mxu2 %v1638_v31 }
  0x1c   :  { %v1867_v10 = vsel %vm74_vm1, %v1692_v5, %v73_v9  ;;  %v1676_v9 = vld [vmem:[%s2205_s8] ss:$0 sm:$0xff] }
  0x7e   :  { %v65_v11 = vpop.xlane.xlu0 %64 }
  0x7f   :  { %v76_v12 = vmul.f32 %v1867_v10, %v65_v11 }
  0x81   :  { %v78_v13 = vsub.f32 %v58_v0, %v76_v12  ;;  %v1642_v12 = vld [vmem:[%s2202_s5 + $0x10] sm:$0xff] }
  0x83   :  { %v80_v14 = vmul.f32 %v78_v13, %v78_v13 }
  0x85   :  { %v82_v15 = vsel %vm62_vm0, %v80_v14, 0.0 }
  0x86   :  { %83 = vadd.xlane.f32.xlu1 %v82_v15  ;;  %v68_v16 = vpop.xlane.xlu0 %67 }
  0x87   :  { %v77_v17 = vmul.f32 %v1867_v10, %v68_v16 }
  0x89   :  { %v79_v18 = vsub.f32 %v59_v2, %v77_v17 }
  0x8b   :  { %v81_v19 = vmul.f32 %v79_v18, %v79_v18 }
  0x8d   :  { %v85_v20 = vsel %vm62_vm0, %v81_v19, 0.0 }
  0x8e   :  { %86 = vadd.xlane.f32.xlu1 %v85_v20 }
  0xf9   :  { %v84_v23 = vpop.xlane.xlu1 %83 }
  0xfa   :  { %v88_v24 = vmul.f32 %v84_v23, %v1867_v10  ;;  %v126_v23 = vshrl.u32 %v125_v22, 7 }
  0xfc   :  { %v90_v27 = vadd.f32 1e-05, %v88_v24  ;;  %v128_v24 = vand.u32 127, %v125_v22 }
  0xfe   :  { %1693 = vrsqrt.f32 %v90_v27  ;;  %vm98_vm3 = vweird.f32 %v90_v27  ;;  %vm1938_vm10 = vcmp.ge.s32.totalorder %v126_v23, %v128_v24 }
 0x101   :  { %v87_v29 = vpop.xlane.xlu1 %86 }
 0x102   :  { %v89_v30 = vmul.f32 %v87_v29, %v1867_v10 }
 0x104   :  { %v1694_v32 = vpop.eup %1693  ;;  %v91_v33 = vadd.f32 1e-05, %v89_v30 }
 0x105   :  { %v93_v34 = vmul.f32 %v1694_v32, %v90_v27  ;;  %vm99_vm2 = vweird.f32 %v1694_v32 }
 0x106   :  { %1695 = vrsqrt.f32 %v91_v33  ;;  %vm100_vm4 = vmor %vm98_vm3, %vm99_vm2  ;;  %vm108_vm6 = vweird.f32 %v91_v33 }
 0x107   :  { %v94_v35 = vmul.f32 %v1694_v32, %v93_v34  ;;  %v1677_v34 = vld [vmem:[%s2201_s4 + $0x1] ss:$0 sm:$0xff] }
 0x109   :  { %v95_v36 = vmul.f32 0.5, %v94_v35  ;;  %v1678_v35 = vld [vmem:[%s2203_s6 + $0x1] ss:$0 sm:$0xff] }
 0x10b   :  { %v96_v37 = vsub.f32 1.5, %v95_v36 }
 0x10c   :  { %v1696_v38 = vpop.eup %1695 }
 0x10d   :  { %v97_v39 = vmul.f32 %v1694_v32, %v96_v37  ;;  %v103_v40 = vmul.f32 %v1696_v38, %v91_v33  ;;  %vm109_vm5 = vweird.f32 %v1696_v38 }
 0x10e   :  { %vm110_vm7 = vmor %vm108_vm6, %vm109_vm5 }
 0x10f   :  { %v104_v41 = vmul.f32 %v1696_v38, %v103_v40  ;;  %v101_v42 = vsel %vm100_vm4, %v1694_v32, %v97_v39 }
 0x110   :  { %v112_v46 = vmul.f32 %v101_v42, %v78_v13 }
 0x111   :  { %v105_v43 = vmul.f32 0.5, %v104_v41 }
 0x112   :  { %v117_v50 = vmul.f32 %v1672_v45, %v112_v46 }
 0x113   :  { %v106_v44 = vsub.f32 1.5, %v105_v43 }
 0x114   :  { %v122_v53 = vadd.f32 %v1673_v49, %v117_v50 }
 0x115   :  { %v107_v47 = vmul.f32 %v1696_v38, %v106_v44 }
 0x117   :  { %v111_v48 = vsel %vm110_vm7, %v1696_v38, %v107_v47 }
 0x118   :  { %v113_v51 = vmul.f32 %v111_v48, %v79_v18 }
 0x11a   :  { %v118_v52 = vmul.f32 %v1672_v45, %v113_v51 }
 0x11c   :  { %v123_v54 = vadd.f32 %v1673_v49, %v118_v52 }
 0x11e   :  { %v1899_v55 = vpack.c.bf16 %v123_v54, %v122_v53 }
 0x120   :  { %1425 = vmatmul.msk.bf16.vlgmr.msra.gmra.mxu0 %vm62_vm0, %v1899_v55  ;;  %1434 = vmatmul.msk.bf16.vlgmr.msra.gmra.mxu2 %vm62_vm0, %v1899_v55 }
 0x130   :  { %1443 = vmatmul.msk.bf16.vlgmr.msrb.gmra.mxu2 %vm62_vm0, %v1899_v55 }
 0x19d   :  { %v162_v59 = vpop.f32.mrf.mxu0 }
 0x19e   :  { %v163_v0 = vadd.f32 %v1674_v60, %v162_v59 }
 0x1a0   :  { %v235_v4 = vpack.c.bf16 %v163_v0, %v163_v0  ;;  %v1645_v0 = vld [vmem:[%s2204_s7 + $0x18] sm:$0xff] }
 0x1a3   :  { %v196_v57 = vpop.f32.mrf.mxu2 }
 0x1a4   :  { %v197_v58 = vadd.f32 %v1675_v56, %v196_v57 }
 0x1a5   :  { %v164_v7 = vpop.f32.mrf.mxu0 }
 0x1a6   :  { %v237_v61 = vpack.c.bf16 %v197_v58, %v197_v58  ;;  %v165_v11 = vadd.f32 %v1674_v60, %v164_v7 }
 0x1a8   :  { %v244_v63 = vsel %vm239_vm8, %v237_v61, 0  ;;  %v236_v15 = vpack.c.bf16 %v165_v11, %v165_v11 }
 0x1a9   :  { %253 = vmatpush.bf16.xpose.msra.mxu3 %v244_v63 }
 0x1ab   :  { %v198_v2 = vpop.f32.mrf.mxu2 }
 0x1ac   :  { %v199_v3 = vadd.f32 %v1675_v56, %v198_v2 }
 0x1ae   :  { %v238_v5 = vpack.c.bf16 %v199_v3, %v199_v3 }
 0x1b0   :  { %1444 = vmatmul.msk.bf16.vlgmr.msra.gmra.mxu3 %vm239_vm8, %v235_v4  ;;  %v263_v8 = vsel %vm239_vm8, %v238_v5, 0 }
 0x1b1   :  { %401 = vmatpush.bf16.msrb.mxu3 %v1641_v62  ;;  %272 = vmatpush.bf16.xpose.msrb.mxu0 %v263_v8 }
 0x1b3   :  { %v230_v13 = vpop.f32.mrf.mxu2 }
 0x1b4   :  { %v231_v14 = vadd.f32 %v1676_v9, %v230_v13 }
 0x1b5   :  { %402 = vmatpush.bf16.msrb.mxu3 %v1640_v1  ;;  %v1644_v1 = vld [vmem:[%s2204_s7 + $0x10] sm:$0xff] }
 0x1b6   :  { %v330_v16 = vpack.c.bf16 %v231_v14, %v231_v14 }
 0x1b8   :  { %1445 = vmatmul.msk.bf16.vlgmr.msrb.gmra.mxu0 %vm239_vm8, %v236_v15  ;;  %v337_v17 = vsel %vm335_vm9, %v330_v16, 0 }
 0x1b9   :  { %437 = vmatpush.bf16.msra.mxu0 %v1643_v6  ;;  %346 = vmatpush.bf16.msra.mxu1 %v337_v17 }
 0x1bb   :  { %v232_v18 = vpop.f32.mrf.mxu2 }
 0x1bc   :  { %v233_v19 = vadd.f32 %v1676_v9, %v232_v18 }
 0x1bd   :  { %438 = vmatpush.bf16.msra.mxu0 %v1642_v12  ;;  %473 = vmatpush.bf16.msrb.mxu1 %v1645_v0 }
 0x1be   :  { %v331_v20 = vpack.c.bf16 %v233_v19, %v233_v19 }
 0x1c0   :  { %v356_v21 = vsel %vm335_vm9, %v331_v20, 0  ;;  %1461 = vmatmul.msk.bf16.vlgmr.msrb.gmra.mxu3 %vm62_vm0, %v1899_v55 }
 0x1c1   :  { %365 = vmatpush.bf16.msra.mxu2 %v356_v21  ;;  %474 = vmatpush.bf16.msrb.mxu1 %v1644_v1 }
 0x1c8   :  { %1475 = vmatmul.msk.bf16.vlgmr.msra.gmra.mxu0 %vm62_vm0, %v1899_v55 }
 0x233   :  { %v255_v26 = vpop.f32.mrf.mxu3 }
 0x234   :  { %v278_v27 = vsel %vm1938_vm10, %v255_v26, -1e+30 }
 0x235   :  { %v274_v28 = vpop.f32.mrf.mxu0  ;;  %v280_v29 = vsel %vm239_vm8, %v278_v27, -inf }
 0x236   :  { %v279_v30 = vsel %vm1938_vm10, %v274_v28, -1e+30  ;;  %281 = vmax.xlane.f32.xlu0 %v280_v29 }
 0x237   :  { %v283_v31 = vsel %vm239_vm8, %v279_v30, -inf }
 0x238   :  { %284 = vmax.xlane.f32.xlu2 %v283_v31 }
 0x23b   :  { %v257_v32 = vpop.f32.mrf.mxu3 }
 0x23d   :  { %v276_v33 = vpop.f32.mrf.mxu0 }
 0x243   :  { %v404_v36 = vpop.f32.mrf.mxu3 }
 0x244   :  { %v1954_v37 = vadd.f32 %v1677_v34, %v404_v36  ;;  %v372_v36 = vld [vmem:[%s2206_s9] sm:$0xf] }
 0x245   :  { %v440_v38 = vpop.f32.mrf.mxu0 }
 0x246   :  { %v441_v39 = vadd.f32 %v1678_v35, %v440_v38  ;;  %v642_v38 = vsel %vm335_vm9, %v372_v36, 0 }
 0x248   :  { %v483_v40 = vpack.c.bf16 %v441_v39, %v441_v39 }
 0x24a   :  { %v489_v41 = vsel %vm239_vm8, %v483_v40, 0 }
 0x24b   :  { %498 = vmatpush.bf16.xpose.msrb.mxu2 %v489_v41  ;;  %v406_v45 = vpop.f32.mrf.mxu3 }
 0x24c   :  { %v407_v47 = vadd.f32 %v1677_v34, %v406_v45 }
 0x24d   :  { %v442_v42 = vpop.f32.mrf.mxu0 }
 0x24e   :  { %v443_v43 = vadd.f32 %v1678_v35, %v442_v42  ;;  %v482_v48 = vpack.c.bf16 %v407_v47, %v407_v47  ;;  %v1679_v42 = vld [vmem:[%s2205_s8 + $0x1] ss:$0 sm:$0xff] }
 0x250   :  { %v484_v44 = vpack.c.bf16 %v443_v43, %v443_v43 }
 0x252   :  { %v508_v46 = vsel %vm239_vm8, %v484_v44, 0 }
 0x253   :  { %517 = vmatpush.bf16.xpose.msra.mxu3 %v508_v46 }
 0x25a   :  { %1491 = vmatmul.msk.bf16.vlgmr.msra.gmra.mxu3 %vm239_vm8, %v482_v48 }
 0x25b   :  { %651 = vmatpush.bf16.msrb.mxu3 %v642_v38 }
 0x2a9   :  { %v282_v49 = vpop.xlane.xlu0 %281 }
 0x2aa   :  { %v286_v50 = vsub.f32 %v278_v27, %v282_v49 }
 0x2ab   :  { %v285_v51 = vpop.xlane.xlu2 %284 }
 0x2ac   :  { %v288_v52 = vmul.f32 1.442695, %v286_v50  ;;  %v287_v53 = vsub.f32 %v279_v30, %v285_v51  ;;  %v481_v30 = vpack.c.bf16 %v1954_v37, %v1954_v37 }
 0x2ae   :  { %1697 = vpow2.f32 %v288_v52  ;;  %v290_v54 = vmul.f32 1.442695, %v287_v53 }
 0x2b0   :  { %1699 = vpow2.f32 %v290_v54 }
 0x2b4   :  { %v1698_v56 = vpop.eup %1697 }
 0x2b5   :  { %v292_v57 = vsel %vm239_vm8, %v1698_v56, 0.0 }
 0x2b6   :  { %v1700_v58 = vpop.eup %1699  ;;  %293 = vadd.xlane.f32.xlu1 %v292_v57 }
 0x2b7   :  { %v295_v59 = vsel %vm239_vm8, %v1700_v58, 0.0 }
 0x2b8   :  { %296 = vadd.xlane.f32.xlu2 %v295_v59 }
 0x2dd   :  { %v519_v60 = vpop.f32.mrf.mxu3 }
 0x2de   :  { %v524_v61 = vsel %vm1938_vm10, %v519_v60, -1e+30  ;;  %v1648_v60 = vld [vmem:[%s2202_s5 + $0x20] sm:$0xff] }
 0x2df   :  { %v528_v62 = vsel %vm239_vm8, %v524_v61, -inf }
 0x2e0   :  { %529 = vmax.xlane.f32.xlu2 %v528_v62 }
 0x2e5   :  { %v521_v63 = vpop.f32.mrf.mxu3 }
 0x329   :  { %v294_v2 = vpop.xlane.xlu1 %293 }
 0x32a   :  { %1701 = vrcp.f32 %v294_v2  ;;  %v309_v9 = vand.u32 2147483648, %v294_v2  ;;  %v307_v13 = vand.u32 2147483647, %v294_v2  ;;  %vm303_vm12 = vweird.f32 %v294_v2 }
 0x32b   :  { %v297_v3 = vpop.xlane.xlu2 %296 }
 0x32c   :  { %1703 = vrcp.f32 %v297_v3  ;;  %v323_v14 = vand.u32 2147483648, %v297_v3  ;;  %v321_v16 = vand.u32 2147483647, %v297_v3  ;;  %v310_v18 = vor.u32 1.1754944e-38, %v309_v9 }
 0x32d   :  { %vm317_vm15 = vweird.f32 %v297_v3  ;;  %vm308_vm1 = vcmp.eq.f32.partialorder %v307_v13, 8.507059e+37 }
 0x32e   :  { %v324_v21 = vor.u32 1.1754944e-38, %v323_v14  ;;  %vm322_vm3 = vcmp.eq.f32.partialorder %v321_v16, 8.507059e+37  ;;  %v1680_v16 = vld [vmem:[%s2203_s6 + $0x2] ss:$0 sm:$0xff] }
 0x330   :  { %v1702_v4 = vpop.eup %1701 }
 0x331   :  { %v299_v5 = vmul.f32 %v1702_v4, %v294_v2  ;;  %vm304_vm11 = vweird.f32 %v1702_v4 }
 0x332   :  { %v1704_v6 = vpop.eup %1703  ;;  %vm305_vm14 = vmor %vm303_vm12, %vm304_vm11 }
 0x333   :  { %v300_v7 = vsub.f32 1.0, %v299_v5  ;;  %v313_v8 = vmul.f32 %v1704_v6, %v297_v3  ;;  %vm318_vm13 = vweird.f32 %v1704_v6 }
 0x334   :  { %vm319_vm2 = vmor %vm317_vm15, %vm318_vm13 }
 0x335   :  { %v301_v11 = vmul.f32 %v1702_v4, %v300_v7  ;;  %v314_v12 = vsub.f32 1.0, %v313_v8 }
 0x337   :  { %v315_v15 = vmul.f32 %v1704_v6, %v314_v12  ;;  %v302_v17 = vadd.f32 %v1702_v4, %v301_v11 }
 0x339   :  { %v316_v19 = vadd.f32 %v1704_v6, %v315_v15  ;;  %v306_v20 = vsel %vm305_vm14, %v1702_v4, %v302_v17 }
 0x33a   :  { %v311_v22 = vsel %vm308_vm1, %v310_v18, %v306_v20 }
 0x33b   :  { %v320_v23 = vsel %vm319_vm2, %v1704_v6, %v316_v19  ;;  %v326_v24 = vmul.f32 %v1698_v56, %v311_v22  ;;  %v1649_v56 = vld [vmem:[%s2202_s5 + $0x28] sm:$0xff]  ;;  %v1646_v22 = vld [vmem:[%s2200_s3 + $0x20] sm:$0xff] }
 0x33c   :  { %v325_v26 = vsel %vm322_vm3, %v324_v21, %v320_v23  ;;  %v1647_v21 = vld [vmem:[%s2200_s3 + $0x28] sm:$0xff] }
 0x33d   :  { %v327_v27 = vmul.f32 %v1700_v58, %v325_v26  ;;  %v328_v28 = vpack.c.bf16 %v326_v24, %v326_v24 }
 0x33f   :  { %1446 = vmatmul.msk.bf16.vlgmr.msra.gmra.mxu1 %vm239_vm8, %v328_v28  ;;  %v329_v29 = vpack.c.bf16 %v327_v27, %v327_v27 }
 0x341   :  { %1447 = vmatmul.msk.bf16.vlgmr.msra.gmra.mxu2 %vm239_vm8, %v329_v29 }
 0x34f   :  { %1489 = vmatmul.msk.bf16.vlgmr.msrb.gmra.mxu1 %vm62_vm0, %v1899_v55 }
 0x351   :  { %1490 = vmatmul.msk.bf16.vlgmr.msrb.gmra.mxu2 %vm239_vm8, %v481_v30 }
 0x353   :  { %v530_v31 = vpop.xlane.xlu2 %529 }
 0x354   :  { %v532_v32 = vsub.f32 %v524_v61, %v530_v31 }
 0x356   :  { %v535_v33 = vmul.f32 1.442695, %v532_v32 }
 0x358   :  { %1705 = vpow2.f32 %v535_v33 }
 0x35e   :  { %v1706_v34 = vpop.eup %1705 }
 0x35f   :  { %v540_v35 = vsel %vm239_vm8, %v1706_v34, 0.0 }
 0x360   :  { %541 = vadd.xlane.f32.xlu1 %v540_v35 }
 0x3bc   :  { %v348_v37 = vpop.f32.mrf.mxu1 }
 0x3c4   :  { %v350_v39 = vpop.f32.mrf.mxu1  ;;  %v367_v40 = vpop.f32.mrf.mxu2 }
 0x3c5   :  { %v371_v41 = vpack.c.bf16 %v367_v40, %v348_v37 }
 0x3c7   :  { %1496 = vmatmul.msk.bf16.vlgmr.msrb.gmra.mxu3 %vm239_vm8, %v371_v41  ;;  %v1494_v41 = vld [vmem:[%s2206_s9 + $0x4] sm:$0xf] }
 0x3cc   :  { %v369_v43 = vpop.f32.mrf.mxu2  ;;  %v476_v44 = vpop.f32.mrf.mxu1 }
 0x3cd   :  { %v477_v45 = vadd.f32 %v1679_v42, %v476_v44  ;;  %v1651_v43 = vld [vmem:[%s2204_s7 + $0x28] sm:$0xff]  ;;  %v1650_v44 = vld [vmem:[%s2204_s7 + $0x20] sm:$0xff] }
 0x3cf   :  { %v575_v46 = vpack.c.bf16 %v477_v45, %v477_v45  ;;  %v1653_v45 = vld [vmem:[%s2200_s3 + $0x38] sm:$0xff] }
 0x3d1   :  { %v581_v47 = vsel %vm335_vm9, %v575_v46, 0  ;;  %v1652_v46 = vld [vmem:[%s2200_s3 + $0x30] sm:$0xff] }
 0x3d2   :  { %590 = vmatpush.bf16.msrb.mxu0 %v581_v47 }
 0x3d3   :  { %v542_v48 = vpop.xlane.xlu1 %541 }
 0x3d4   :  { %1707 = vrcp.f32 %v542_v48  ;;  %v478_v49 = vpop.f32.mrf.mxu1  ;;  %v500_v50 = vpop.f32.mrf.mxu2  ;;  %v568_v63 = vand.u32 2147483648, %v542_v48  ;;  %v566_v1 = vand.u32 2147483647, %v542_v48  ;;  %vm562_vm5 = vweird.f32 %v542_v48 }
 0x3d5   :  { %v479_v51 = vadd.f32 %v1679_v42, %v478_v49  ;;  %v523_v52 = vsel %vm1938_vm10, %v500_v50, -1e+30  ;;  %v622_v42 = vsel %vm335_vm9, %v1494_v41, 0  ;;  %v1681_v50 = vld [vmem:[%s2201_s4 + $0x2] ss:$0 sm:$0xff] }
 0x3d6   :  { %v525_v53 = vsel %vm239_vm8, %v523_v52, -inf  ;;  %v569_v3 = vor.u32 1.1754944e-38, %v568_v63  ;;  %vm567_vm7 = vcmp.eq.f32.partialorder %v566_v1, 8.507059e+37  ;;  %686 = vmatpush.bf16.msra.mxu0 %v1647_v21  ;;  %631 = vmatpush.bf16.msra.mxu2 %v622_v42  ;;  %v1682_v63 = vld [vmem:[%s2205_s8 + $0x2] ss:$0 sm:$0xff] }
 0x3d7   :  { %v576_v54 = vpack.c.bf16 %v479_v51, %v479_v51  ;;  %526 = vmax.xlane.f32.xlu0 %v525_v53 }
 0x3d9   :  { %v600_v57 = vsel %vm335_vm9, %v576_v54, 0 }
 0x3da   :  { %v1708_v58 = vpop.eup %1707  ;;  %609 = vmatpush.bf16.msra.mxu1 %v600_v57  ;;  %687 = vmatpush.bf16.msra.mxu0 %v1646_v22 }
 0x3db   :  { %v558_v59 = vmul.f32 %v1708_v58, %v542_v48  ;;  %vm563_vm4 = vweird.f32 %v1708_v58  ;;  %758 = vmatpush.bf16.msrb.mxu2 %v1651_v43 }
 0x3dc   :  { %v502_v61 = vpop.f32.mrf.mxu2  ;;  %vm564_vm6 = vmor %vm562_vm5, %vm563_vm4 }
 0x3dd   :  { %v559_v62 = vsub.f32 1.0, %v558_v59 }
 0x3de   :  { %722 = vmatpush.bf16.msrb.mxu1 %v1649_v56 }
 0x3df   :  { %v560_v0 = vmul.f32 %v1708_v58, %v559_v62  ;;  %759 = vmatpush.bf16.msrb.mxu2 %v1650_v44 }
 0x3e1   :  { %v561_v2 = vadd.f32 %v1708_v58, %v560_v0 }
 0x3e2   :  { %723 = vmatpush.bf16.msrb.mxu1 %v1648_v60 }
 0x3e3   :  { %v565_v4 = vsel %vm564_vm6, %v1708_v58, %v561_v2 }
 0x3e4   :  { %v570_v5 = vsel %vm567_vm7, %v569_v3, %v565_v4 }
 0x3e5   :  { %v572_v6 = vmul.f32 %v1706_v34, %v570_v5 }
 0x3e7   :  { %v574_v7 = vpack.c.bf16 %v572_v6, %v572_v6 }
 0x3e9   :  { %1493 = vmatmul.msk.bf16.vlgmr.msra.gmra.mxu1 %vm239_vm8, %v574_v7 }
 0x3f9   :  { %1524 = vmatmul.msk.bf16.vlgmr.msrb.gmra.mxu1 %vm62_vm0, %v1899_v55 }
 0x44a   :  { %v527_v8 = vpop.xlane.xlu0 %526  ;;  %v2041_v58 = vpop.f32.mrf.mxu3 }
 0x44b   :  { %v531_v9 = vsub.f32 %v523_v52, %v527_v8 }
 0x44d   :  { %v533_v11 = vmul.f32 1.442695, %v531_v9 }
 0x44f   :  { %1709 = vpow2.f32 %v533_v11 }
 0x452   :  { %v655_v60 = vpop.f32.mrf.mxu3 }
 0x455   :  { %v1710_v12 = vpop.eup %1709 }
 0x456   :  { %v537_v13 = vsel %vm239_vm8, %v1710_v12, 0.0 }
 0x457   :  { %538 = vadd.xlane.f32.xlu2 %v537_v13 }
 0x466   :  { %v611_v14 = vpop.f32.mrf.mxu1 }
 0x46e   :  { %v613_v15 = vpop.f32.mrf.mxu1 }
 0x476   :  { %v725_v17 = vpop.f32.mrf.mxu1 }
 0x477   :  { %v726_v18 = vadd.f32 %v1680_v16, %v725_v17 }
 0x479   :  { %v768_v19 = vpack.c.bf16 %v726_v18, %v726_v18 }
 0x47b   :  { %v774_v20 = vsel %vm239_vm8, %v768_v19, 0 }
 0x47c   :  { %783 = vmatpush.bf16.xpose.msra.mxu3 %v774_v20 }
 0x47e   :  { %v727_v28 = vpop.f32.mrf.mxu1 }
 0x47f   :  { %v728_v32 = vadd.f32 %v1680_v16, %v727_v28  ;;  %v1655_v28 = vld [vmem:[%s2202_s5 + $0x38] sm:$0xff] }
 0x481   :  { %v769_v38 = vpack.c.bf16 %v728_v32, %v728_v32 }
 0x483   :  { %v793_v40 = vsel %vm239_vm8, %v769_v38, 0 }
 0x4ca   :  { %v539_v23 = vpop.xlane.xlu2 %538 }
 0x4cb   :  { %1711 = vrcp.f32 %v539_v23  ;;  %v554_v29 = vand.u32 2147483648, %v539_v23  ;;  %v552_v31 = vand.u32 2147483647, %v539_v23  ;;  %vm548_vm12 = vweird.f32 %v539_v23 }
 0x4cd   :  { %v555_v34 = vor.u32 1.1754944e-38, %v554_v29  ;;  %vm553_vm14 = vcmp.eq.f32.partialorder %v552_v31, 8.507059e+37  ;;  %v1657_v29 = vld [vmem:[%s2204_s7 + $0x38] sm:$0xff]  ;;  %v1656_v31 = vld [vmem:[%s2204_s7 + $0x30] sm:$0xff] }
 0x4d1   :  { %v1712_v24 = vpop.eup %1711 }
 0x4d2   :  { %v544_v26 = vmul.f32 %v1712_v24, %v539_v23  ;;  %vm549_vm11 = vweird.f32 %v1712_v24 }
 0x4d3   :  { %vm550_vm13 = vmor %vm548_vm12, %vm549_vm11 }
 0x4d4   :  { %v545_v27 = vsub.f32 1.0, %v544_v26 }
 0x4d6   :  { %v546_v30 = vmul.f32 %v1712_v24, %v545_v27 }
 0x4d8   :  { %v547_v33 = vadd.f32 %v1712_v24, %v546_v30  ;;  %v1654_v30 = vld [vmem:[%s2202_s5 + $0x30] sm:$0xff] }
 0x4da   :  { %v551_v35 = vsel %vm550_vm13, %v1712_v24, %v547_v33 }
 0x4db   :  { %v556_v36 = vsel %vm553_vm14, %v555_v34, %v551_v35 }
 0x4dc   :  { %v571_v37 = vmul.f32 %v1710_v12, %v556_v36 }
 0x4de   :  { %v573_v39 = vpack.c.bf16 %v571_v37, %v571_v37 }
 0x4e0   :  { %1492 = vmatmul.msk.bf16.vlgmr.msrb.gmra.mxu0 %vm239_vm8, %v573_v39 }
 0x4e1   :  { %802 = vmatpush.bf16.xpose.msrb.mxu0 %v793_v40 }
 0x4f0   :  { %1510 = vmatmul.msk.bf16.vlgmr.msra.gmra.mxu0 %vm62_vm0, %v1899_v55 }
 0x4f1   :  { %953 = vmatpush.bf16.msra.mxu0 %v1653_v45 }
 0x4f5   :  { %954 = vmatpush.bf16.msra.mxu0 %v1652_v46 }
 0x55d   :  { %v592_v47 = vpop.f32.mrf.mxu0 }
 0x55e   :  { %v615_v48 = vpack.c.bf16 %v611_v14, %v592_v47 }
 0x560   :  { %1495 = vmatmul.msk.bf16.vlgmr.msra.gmra.mxu2 %vm239_vm8, %v615_v48 }
 0x565   :  { %v594_v49 = vpop.f32.mrf.mxu0 }
 0x56d   :  { %v689_v51 = vpop.f32.mrf.mxu0 }
 0x56e   :  { %v690_v52 = vadd.f32 %v1681_v50, %v689_v51 }
 0x570   :  { %v766_v53 = vpack.c.bf16 %v690_v52, %v690_v52  ;;  %1538 = vmatmul.msk.bf16.vlgmr.msrb.gmra.mxu2 %vm62_vm0, %v1899_v55 }
 0x572   :  { %1539 = vmatmul.msk.bf16.vlgmr.msra.gmra.mxu3 %vm239_vm8, %v766_v53 }
 0x575   :  { %v691_v54 = vpop.f32.mrf.mxu0 }
 0x576   :  { %v692_v56 = vadd.f32 %v1681_v50, %v691_v54 }
 0x578   :  { %v767_v57 = vpack.c.bf16 %v692_v56, %v692_v56 }
 0x57a   :  { %1540 = vmatmul.msk.bf16.vlgmr.msrb.gmra.mxu0 %vm239_vm8, %v767_v57 }
 0x58a   :  { %1558 = vmatmul.msk.bf16.vlgmr.msra.gmra.mxu0 %vm62_vm0, %v1899_v55 }
 0x5e3   :  { %v2043_v59 = vpop.f32.mrf.mxu2 }
 0x5eb   :  { %v635_v61 = vpop.f32.mrf.mxu2 }
 0x5ec   :  { %v2045_v62 = vadd.f32 %v655_v60, %v635_v61  ;;  %v1543_v61 = vld [vmem:[%s2206_s9 + $0x8] sm:$0xf] }
 0x5f3   :  { %v761_v0 = vpop.f32.mrf.mxu2 }
 0x5f4   :  { %v762_v1 = vadd.f32 %v1682_v63, %v761_v0 }
 0x5f5   :  { %v785_v2 = vpop.f32.mrf.mxu3 }
 0x5f6   :  { %v860_v3 = vpack.c.bf16 %v762_v1, %v762_v1  ;;  %v808_v4 = vsel %vm1938_vm10, %v785_v2, -1e+30 }
 0x5f7   :  { %v804_v5 = vpop.f32.mrf.mxu0  ;;  %v810_v6 = vsel %vm239_vm8, %v808_v4, -inf }
 0x5f8   :  { %v866_v7 = vsel %vm335_vm9, %v860_v3, 0  ;;  %v809_v8 = vsel %vm1938_vm10, %v804_v5, -1e+30  ;;  %811 = vmax.xlane.f32.xlu0 %v810_v6 }
 0x5f9   :  { %875 = vmatpush.bf16.msra.mxu1 %v866_v7  ;;  %v813_v9 = vsel %vm239_vm8, %v809_v8, -inf }
 0x5fa   :  { %814 = vmax.xlane.f32.xlu1 %v813_v9 }
 0x5fb   :  { %v763_v11 = vpop.f32.mrf.mxu2 }
 0x5fc   :  { %v764_v12 = vadd.f32 %v1682_v63, %v763_v11  ;;  %v907_v63 = vsel %vm335_vm9, %v1543_v61, 0 }
 0x5fd   :  { %v787_v13 = vpop.f32.mrf.mxu3  ;;  %989 = vmatpush.bf16.msrb.mxu1 %v1655_v28  ;;  %916 = vmatpush.bf16.msrb.mxu3 %v907_v63 }
 0x5fe   :  { %v861_v14 = vpack.c.bf16 %v764_v12, %v764_v12  ;;  %v1685_v12 = vld [vmem:[%s2205_s8 + $0x3] ss:$0 sm:$0xff] }
 0x5ff   :  { %v806_v15 = vpop.f32.mrf.mxu0 }
 0x600   :  { %v885_v16 = vsel %vm335_vm9, %v861_v14, 0 }
 0x601   :  { %894 = vmatpush.bf16.msra.mxu2 %v885_v16  ;;  %990 = vmatpush.bf16.msrb.mxu1 %v1654_v30 }
 0x605   :  { %1025 = vmatpush.bf16.msrb.mxu2 %v1657_v29 }
 0x607   :  { %v956_v7 = vpop.f32.mrf.mxu0 }
 0x609   :  { %1026 = vmatpush.bf16.msrb.mxu2 %v1656_v31  ;;  %v654_v31 = vadd.f32 %v2041_v58, %v2043_v59 }
 0x66b   :  { %v812_v17 = vpop.xlane.xlu0 %811 }
 0x66c   :  { %v816_v18 = vsub.f32 %v808_v4, %v812_v17  ;;  %v1684_v4 = vld [vmem:[%s2203_s6 + $0x3] ss:$0 sm:$0xff] }
 0x66d   :  { %v815_v19 = vpop.xlane.xlu1 %814 }
 0x66e   :  { %v818_v20 = vmul.f32 1.442695, %v816_v18  ;;  %v817_v21 = vsub.f32 %v809_v8, %v815_v19  ;;  %v1683_v8 = vld [vmem:[%s2201_s4 + $0x3] ss:$0 sm:$0xff] }
 0x66f   :  { %v957_v13 = vadd.f32 %v1683_v8, %v956_v7 }
 0x670   :  { %1713 = vpow2.f32 %v818_v20  ;;  %v820_v22 = vmul.f32 1.442695, %v817_v21  ;;  %v958_v21 = vpop.f32.mrf.mxu0 }
 0x671   :  { %v1033_v18 = vpack.c.bf16 %v957_v13, %v957_v13 }
 0x672   :  { %1715 = vpow2.f32 %v820_v22 }
 0x676   :  { %v1714_v23 = vpop.eup %1713 }
 0x677   :  { %v822_v24 = vsel %vm239_vm8, %v1714_v23, 0.0 }
 0x678   :  { %v1716_v26 = vpop.eup %1715  ;;  %823 = vadd.xlane.f32.xlu2 %v822_v24  ;;  %v959_v24 = vadd.f32 %v1683_v8, %v958_v21 }
 0x679   :  { %v825_v27 = vsel %vm239_vm8, %v1716_v26, 0.0 }
 0x67a   :  { %826 = vadd.xlane.f32.xlu0 %v825_v27  ;;  %v1034_v28 = vpack.c.bf16 %v959_v24, %v959_v24 }
 0x6eb   :  { %v824_v32 = vpop.xlane.xlu2 %823 }
 0x6ec   :  { %1717 = vrcp.f32 %v824_v32  ;;  %v839_v39 = vand.u32 2147483648, %v824_v32  ;;  %v837_v41 = vand.u32 2147483647, %v824_v32  ;;  %vm833_vm1 = vweird.f32 %v824_v32 }
 0x6ed   :  { %v827_v33 = vpop.xlane.xlu0 %826 }
 0x6ee   :  { %1719 = vrcp.f32 %v827_v33  ;;  %v853_v43 = vand.u32 2147483648, %v827_v33  ;;  %v851_v46 = vand.u32 2147483647, %v827_v33  ;;  %v840_v47 = vor.u32 1.1754944e-38, %v839_v39 }
 0x6ef   :  { %vm838_vm4 = vcmp.eq.f32.partialorder %v837_v41, 8.507059e+37  ;;  %vm847_vm5 = vweird.f32 %v827_v33 }
 0x6f0   :  { %v854_v51 = vor.u32 1.1754944e-38, %v853_v43  ;;  %vm852_vm7 = vcmp.eq.f32.partialorder %v851_v46, 8.507059e+37 }
 0x6f2   :  { %v1718_v34 = vpop.eup %1717 }
 0x6f3   :  { %v829_v35 = vmul.f32 %v1718_v34, %v824_v32  ;;  %vm834_vm15 = vweird.f32 %v1718_v34 }
 0x6f4   :  { %v1720_v36 = vpop.eup %1719  ;;  %vm835_vm3 = vmor %vm833_vm1, %vm834_vm15 }
 0x6f5   :  { %v830_v38 = vsub.f32 1.0, %v829_v35  ;;  %v843_v37 = vmul.f32 %v1720_v36, %v827_v33  ;;  %vm848_vm2 = vweird.f32 %v1720_v36 }
 0x6f6   :  { %vm849_vm6 = vmor %vm847_vm5, %vm848_vm2 }
 0x6f7   :  { %v831_v40 = vmul.f32 %v1718_v34, %v830_v38  ;;  %v844_v42 = vsub.f32 1.0, %v843_v37 }
 0x6f9   :  { %v832_v44 = vadd.f32 %v1718_v34, %v831_v40  ;;  %v845_v45 = vmul.f32 %v1720_v36, %v844_v42 }
 0x6fb   :  { %v836_v48 = vsel %vm835_vm3, %v1718_v34, %v832_v44  ;;  %v846_v49 = vadd.f32 %v1720_v36, %v845_v45 }
 0x6fc   :  { %v841_v50 = vsel %vm838_vm4, %v840_v47, %v836_v48 }
 0x6fd   :  { %v856_v52 = vmul.f32 %v1714_v23, %v841_v50  ;;  %v850_v53 = vsel %vm849_vm6, %v1720_v36, %v846_v49 }
 0x6fe   :  { %v855_v54 = vsel %vm852_vm7, %v854_v51, %v850_v53 }
 0x6ff   :  { %v857_v56 = vmul.f32 %v1716_v26, %v855_v54  ;;  %v858_v57 = vpack.c.bf16 %v856_v52, %v856_v52 }
 0x701   :  { %1541 = vmatmul.msk.bf16.vlgmr.msra.gmra.mxu1 %vm239_vm8, %v858_v57  ;;  %v859_v60 = vpack.c.bf16 %v857_v56, %v857_v56 }
 0x703   :  { %1542 = vmatmul.msk.bf16.vlgmr.msra.gmra.mxu2 %vm239_vm8, %v859_v60 }
 0x711   :  { %1572 = vmatmul.msk.bf16.vlgmr.msrb.gmra.mxu1 %vm62_vm0, %v1899_v55 }
 0x713   :  { %1586 = vmatmul.msk.bf16.vlgmr.msrb.gmra.mxu2 %vm62_vm0, %v1899_v55 }
 0x77e   :  { %v877_v0 = vpop.f32.mrf.mxu1 }
 0x786   :  { %v879_v1 = vpop.f32.mrf.mxu1  ;;  %v896_v2 = vpop.f32.mrf.mxu2 }
 0x787   :  { %v900_v3 = vpack.c.bf16 %v896_v2, %v877_v0 }
 0x789   :  { %1544 = vmatmul.msk.bf16.vlgmr.msrb.gmra.mxu3 %vm239_vm8, %v900_v3 }
 0x78e   :  { %v898_v5 = vpop.f32.mrf.mxu2  ;;  %v992_v6 = vpop.f32.mrf.mxu1 }
 0x78f   :  { %v993_v55 = vadd.f32 %v1684_v4, %v992_v6 }
 0x791   :  { %v1035_v9 = vpack.c.bf16 %v993_v55, %v993_v55 }
 0x793   :  { %v1041_v11 = vsel %vm239_vm8, %v1035_v9, 0 }
 0x794   :  { %1050 = vmatpush.bf16.xpose.msra.mxu3 %v1041_v11 }
 0x796   :  { %v994_v14 = vpop.f32.mrf.mxu1  ;;  %v1028_v15 = vpop.f32.mrf.mxu2 }
 0x797   :  { %v995_v16 = vadd.f32 %v1684_v4, %v994_v14  ;;  %v1029_v17 = vadd.f32 %v1685_v12, %v1028_v15 }
 0x799   :  { %v1036_v19 = vpack.c.bf16 %v995_v16, %v995_v16  ;;  %v1127_v20 = vpack.c.bf16 %v1029_v17, %v1029_v17  ;;  %v1591_v16 = vld [vmem:[%s2206_s9 + $0xc] sm:$0xf] }
 0x79a   :  { %v1174_v17 = vsel %vm335_vm9, %v1591_v16, 0  ;;  %v1664_v16 = vld [vmem:[%s2212_s15 + $0x20] sm:$0xff] }
 0x79b   :  { %v1060_v22 = vsel %vm239_vm8, %v1036_v19, 0  ;;  %v1133_v23 = vsel %vm335_vm9, %v1127_v20, 0  ;;  %1587 = vmatmul.msk.bf16.vlgmr.msra.gmra.mxu3 %vm239_vm8, %v1033_v18 }
 0x79c   :  { %1069 = vmatpush.bf16.xpose.msrb.mxu0 %v1060_v22  ;;  %1142 = vmatpush.bf16.msra.mxu1 %v1133_v23 }
 0x79d   :  { %1183 = vmatpush.bf16.msrb.mxu3 %v1174_v17  ;;  %v1663_v17 = vld [vmem:[%s2212_s15 + $0x18] sm:$0xff] }
 0x79e   :  { %v1030_v26 = vpop.f32.mrf.mxu2 }
 0x79f   :  { %v1031_v27 = vadd.f32 %v1685_v12, %v1030_v26  ;;  %v1686_v26 = vld [vmem:[%s2207_s10] ss:$0 sm:$0xff]  ;;  %s1403_s10 = sshll.u32 %s1766_s21, 4  ;;  %s1404_s10 = int_to_ptr.vmem [resolvable:$true] %s1403_s10 }
 0x7a1   :  { %v1128_v29 = vpack.c.bf16 %v1031_v27, %v1031_v27  ;;  %v1737_v27 = vld [vmem:[%s2218_s26] sm:$0xff] }
 0x7a3   :  { %v1152_v30 = vsel %vm335_vm9, %v1128_v29, 0  ;;  %1588 = vmatmul.msk.bf16.vlgmr.msrb.gmra.mxu0 %vm239_vm8, %v1034_v28 }
 0x7a4   :  { %1161 = vmatpush.bf16.msra.mxu2 %v1152_v30 }
 0x80c   :  { %v918_v32 = vpop.f32.mrf.mxu3 }
 0x80d   :  { %v2100_v33 = vadd.f32 %v918_v32, %v654_v31 }
 0x814   :  { %v920_v34 = vpop.f32.mrf.mxu3 }
 0x815   :  { %v2103_v35 = vadd.f32 %v920_v34, %v2045_v62 }
 0x81e   :  { %v1052_v36 = vpop.f32.mrf.mxu3 }
 0x81f   :  { %v1075_v38 = vsel %vm1938_vm10, %v1052_v36, -1e+30 }
 0x820   :  { %v1071_v37 = vpop.f32.mrf.mxu0  ;;  %v1077_v39 = vsel %vm239_vm8, %v1075_v38, -inf }
 0x821   :  { %v1076_v40 = vsel %vm1938_vm10, %v1071_v37, -1e+30  ;;  %1078 = vmax.xlane.f32.xlu2 %v1077_v39 }
 0x822   :  { %v1080_v58 = vsel %vm239_vm8, %v1076_v40, -inf }
 0x823   :  { %1081 = vmax.xlane.f32.xlu1 %v1080_v58 }
 0x826   :  { %v1054_v59 = vpop.f32.mrf.mxu3 }
 0x828   :  { %v1073_v41 = vpop.f32.mrf.mxu0 }
 0x894   :  { %v1079_v42 = vpop.xlane.xlu2 %1078 }
 0x895   :  { %v1083_v43 = vsub.f32 %v1075_v38, %v1079_v42 }
 0x896   :  { %v1082_v62 = vpop.xlane.xlu1 %1081 }
 0x897   :  { %v1085_v44 = vmul.f32 1.442695, %v1083_v43  ;;  %v1084_v45 = vsub.f32 %v1076_v40, %v1082_v62 }
 0x899   :  { %1721 = vpow2.f32 %v1085_v44  ;;  %v1087_v46 = vmul.f32 1.442695, %v1084_v45  ;;  %v1659_v44 = vld [vmem:[%s2210_s13 + $0x8] sm:$0xff] }
 0x89a   :  { %1286 = vmatpush.bf16.msra.mxu0 %v1659_v44 }
 0x89b   :  { %1723 = vpow2.f32 %v1087_v46 }
 0x89f   :  { %v1722_v47 = vpop.eup %1721 }
 0x8a0   :  { %v1089_v48 = vsel %vm239_vm8, %v1722_v47, 0.0 }
 0x8a1   :  { %v1724_v49 = vpop.eup %1723  ;;  %1090 = vadd.xlane.f32.xlu1 %v1089_v48  ;;  %v1658_v48 = vld [vmem:[%s2210_s13] sm:$0xff]  ;;  %s1768_s13 = smov 8  }
 0x8a2   :  { %v1092_v25 = vsel %vm239_vm8, %v1724_v49, 0.0  ;;  %1287 = vmatpush.bf16.msra.mxu0 %v1658_v48 }
 0x8a3   :  { %1093 = vadd.xlane.f32.xlu0 %v1092_v25 }
 0x914   :  { %v1091_v50 = vpop.xlane.xlu1 %1090 }
 0x915   :  { %1725 = vrcp.f32 %v1091_v50  ;;  %v1106_v60 = vand.u32 2147483648, %v1091_v50  ;;  %v1104_v63 = vand.u32 2147483647, %v1091_v50  ;;  %vm1100_vm11 = vweird.f32 %v1091_v50 }
 0x916   :  { %v1094_v51 = vpop.xlane.xlu0 %1093 }
 0x917   :  { %1727 = vrcp.f32 %v1094_v51  ;;  %v1120_v1 = vand.u32 2147483648, %v1094_v51  ;;  %v1118_v4 = vand.u32 2147483647, %v1094_v51  ;;  %v1107_v5 = vor.u32 1.1754944e-38, %v1106_v60 }
 0x918   :  { %vm1105_vm14 = vcmp.eq.f32.partialorder %v1104_v63, 8.507059e+37  ;;  %vm1114_vm15 = vweird.f32 %v1094_v51 }
 0x919   :  { %v1121_v8 = vor.u32 1.1754944e-38, %v1120_v1  ;;  %vm1119_vm2 = vcmp.eq.f32.partialorder %v1118_v4, 8.507059e+37 }
 0x91b   :  { %v1726_v52 = vpop.eup %1725 }
 0x91c   :  { %v1096_v53 = vmul.f32 %v1726_v52, %v1091_v50  ;;  %vm1101_vm10 = vweird.f32 %v1726_v52 }
 0x91d   :  { %v1728_v54 = vpop.eup %1727  ;;  %vm1102_vm13 = vmor %vm1100_vm11, %vm1101_vm10 }
 0x91e   :  { %v1097_v56 = vsub.f32 1.0, %v1096_v53  ;;  %v1110_v57 = vmul.f32 %v1728_v54, %v1094_v51  ;;  %vm1115_vm12 = vweird.f32 %v1728_v54 }
 0x91f   :  { %vm1116_vm1 = vmor %vm1114_vm15, %vm1115_vm12 }
 0x920   :  { %v1098_v61 = vmul.f32 %v1726_v52, %v1097_v56  ;;  %v1111_v0 = vsub.f32 1.0, %v1110_v57 }
 0x922   :  { %v1099_v2 = vadd.f32 %v1726_v52, %v1098_v61  ;;  %v1112_v3 = vmul.f32 %v1728_v54, %v1111_v0 }
 0x924   :  { %v1103_v6 = vsel %vm1102_vm13, %v1726_v52, %v1099_v2  ;;  %v1113_v55 = vadd.f32 %v1728_v54, %v1112_v3 }
 0x925   :  { %v1108_v7 = vsel %vm1105_vm14, %v1107_v5, %v1103_v6  ;;  %v1688_v6 = vld [vmem:[%s2209_s12] ss:$0 sm:$0xff] }
 0x926   :  { %v1123_v9 = vmul.f32 %v1722_v47, %v1108_v7  ;;  %v1117_v11 = vsel %vm1116_vm1, %v1728_v54, %v1113_v55 }
 0x927   :  { %v1122_v12 = vsel %vm1119_vm2, %v1121_v8, %v1117_v11 }
 0x928   :  { %v1124_v13 = vmul.f32 %v1724_v49, %v1122_v12  ;;  %v1125_v14 = vpack.c.bf16 %v1123_v9, %v1123_v9 }
 0x92a   :  { %1589 = vmatmul.msk.bf16.vlgmr.msra.gmra.mxu1 %vm239_vm8, %v1125_v14  ;;  %v1126_v15 = vpack.c.bf16 %v1124_v13, %v1124_v13  ;;  %v1667_v13 = vld [vmem:[%s2212_s15 + $0x38] sm:$0xff]  ;;  %v1666_v14 = vld [vmem:[%s2212_s15 + $0x30] sm:$0xff] }
 0x92b   :  { %1381 = vmatpush.bf16.msrb.mxu1 %v1667_v13 }
 0x92c   :  { %1590 = vmatmul.msk.bf16.vlgmr.msra.gmra.mxu2 %vm239_vm8, %v1126_v15  ;;  %v1665_v15 = vld [vmem:[%s2212_s15 + $0x28] sm:$0xff] }
 0x92f   :  { %1382 = vmatpush.bf16.msrb.mxu1 %v1666_v14 }
 0x933   :  { %1383 = vmatpush.bf16.msrb.mxu1 %v1665_v15 }
 0x937   :  { %1384 = vmatpush.bf16.msrb.mxu1 %v1664_v16 }
 0x93b   :  { %1385 = vmatpush.bf16.msrb.mxu1 %v1663_v17 }
 0x9a7   :  { %v1144_v18 = vpop.f32.mrf.mxu1 }
 0x9af   :  { %v1146_v19 = vpop.f32.mrf.mxu1  ;;  %v1163_v20 = vpop.f32.mrf.mxu2 }
 0x9b0   :  { %v1167_v21 = vpack.c.bf16 %v1163_v20, %v1144_v18  ;;  %v1662_v18 = vld [vmem:[%s2212_s15 + $0x10] sm:$0xff]  ;;  %v1661_v19 = vld [vmem:[%s2212_s15 + $0x8] sm:$0xff]  ;;  %v1660_v20 = vld [vmem:[%s2212_s15] sm:$0xff] }
 0x9b1   :  { %1386 = vmatpush.bf16.msrb.mxu1 %v1662_v18 }
 0x9b2   :  { %1592 = vmatmul.msk.bf16.vlgmr.msrb.gmra.mxu3 %vm239_vm8, %v1167_v21  ;;  %v1689_v21 = vld [vmem:[%s2211_s14] ss:$0 sm:$0xff] }
 0x9b5   :  { %1387 = vmatpush.bf16.msrb.mxu1 %v1661_v19 }
 0x9b7   :  { %v1165_v22 = vpop.f32.mrf.mxu2 }
 0x9b9   :  { %1388 = vmatpush.bf16.msrb.mxu1 %v1660_v20 }
 0xa35   :  { %v1185_v23 = vpop.f32.mrf.mxu3 }
 0xa36   :  { %v1190_v24 = vadd.f32 %v1185_v23, %v2100_v33  ;;  %v1738_v33 = vld [vmem:[%s2218_s26 + $0x8] sm:$0xff] }
 0xa38   :  { %v1192_v28 = vadd.f32 %v1737_v27, %v1190_v24 }
 0xa3a   :  { %v2127_v29 = vadd.f32 %v1686_v26, %v1192_v28 }
 0xa3c   :  { %v1202_v30 = vsel %vm62_vm0, %v2127_v29, 0.0 }
 0xa3d   :  { %1203 = vadd.xlane.f32.xlu2 %v1202_v30  ;;  %v1187_v31 = vpop.f32.mrf.mxu3 }
 0xa3e   :  { %v1191_v32 = vadd.f32 %v1187_v31, %v2103_v35 }
 0xa40   :  { %v1193_v34 = vadd.f32 %v1738_v33, %v1191_v32 }
 0xa42   :  { %v2135_v36 = vadd.f32 %v1686_v26, %v1193_v34 }
 0xa44   :  { %v1205_v38 = vsel %vm62_vm0, %v2135_v36, 0.0 }
 0xa45   :  { %1206 = vadd.xlane.f32.xlu0 %v1205_v38 }
 0xab0   :  { %v1204_v37 = vpop.xlane.xlu2 %1203 }
 0xab1   :  { %v1208_v39 = vmul.f32 %v1204_v37, %v1867_v10 }
 0xab3   :  { %v1210_v40 = vsub.f32 %v2127_v29, %v1208_v39 }
 0xab5   :  { %v1212_v58 = vmul.f32 %v1210_v40, %v1210_v40 }
 0xab7   :  { %v1214_v59 = vsel %vm62_vm0, %v1212_v58, 0.0 }
 0xab8   :  { %1215 = vadd.xlane.f32.xlu1 %v1214_v59  ;;  %v1207_v35 = vpop.xlane.xlu0 %1206 }
 0xab9   :  { %v1209_v41 = vmul.f32 %v1207_v35, %v1867_v10 }
 0xabb   :  { %v1211_v42 = vsub.f32 %v2135_v36, %v1209_v41 }
 0xabd   :  { %v1213_v43 = vmul.f32 %v1211_v42, %v1211_v42 }
 0xabf   :  { %v1217_v62 = vsel %vm62_vm0, %v1213_v43, 0.0 }
 0xac0   :  { %1218 = vadd.xlane.f32.xlu2 %v1217_v62 }
 0xb2b   :  { %v1216_v45 = vpop.xlane.xlu1 %1215 }
 0xb2c   :  { %v1220_v46 = vmul.f32 %v1216_v45, %v1867_v10  ;;  %v1690_v45 = vld [vmem:[%s2213_s16] ss:$0 sm:$0xff]  ;;  %s1767_s16 = smov 128  }
 0xb2e   :  { %v1222_v47 = vadd.f32 1e-05, %v1220_v46 }
 0xb30   :  { %1729 = vrsqrt.f32 %v1222_v47  ;;  %vm1230_vm9 = vweird.f32 %v1222_v47 }
 0xb33   :  { %v1219_v49 = vpop.xlane.xlu2 %1218 }
 0xb34   :  { %v1221_v25 = vmul.f32 %v1219_v49, %v1867_v10  ;;  %v1687_v10 = vld [vmem:[%s2208_s11] ss:$0 sm:$0xff] }
 0xb36   :  { %v1730_v50 = vpop.eup %1729  ;;  %v1223_v51 = vadd.f32 1e-05, %v1221_v25 }
 0xb37   :  { %v1225_v52 = vmul.f32 %v1730_v50, %v1222_v47  ;;  %vm1231_vm8 = vweird.f32 %v1730_v50 }
 0xb38   :  { %1731 = vrsqrt.f32 %v1223_v51  ;;  %vm1232_vm3 = vmor %vm1230_vm9, %vm1231_vm8  ;;  %vm1240_vm5 = vweird.f32 %v1223_v51 }
 0xb39   :  { %v1226_v53 = vmul.f32 %v1730_v50, %v1225_v52 }
 0xb3b   :  { %v1227_v54 = vmul.f32 0.5, %v1226_v53 }
 0xb3d   :  { %v1228_v56 = vsub.f32 1.5, %v1227_v54 }
 0xb3e   :  { %v1732_v57 = vpop.eup %1731 }
 0xb3f   :  { %v1229_v60 = vmul.f32 %v1730_v50, %v1228_v56  ;;  %v1235_v61 = vmul.f32 %v1732_v57, %v1223_v51  ;;  %vm1241_vm4 = vweird.f32 %v1732_v57 }
 0xb40   :  { %vm1242_vm6 = vmor %vm1240_vm5, %vm1241_vm4 }
 0xb41   :  { %v1236_v63 = vmul.f32 %v1732_v57, %v1235_v61  ;;  %v1233_v0 = vsel %vm1232_vm3, %v1730_v50, %v1229_v60 }
 0xb42   :  { %v1244_v3 = vmul.f32 %v1233_v0, %v1210_v40 }
 0xb43   :  { %v1237_v1 = vmul.f32 0.5, %v1236_v63 }
 0xb44   :  { %v1249_v55 = vmul.f32 %v1687_v10, %v1244_v3 }
 0xb45   :  { %v1238_v2 = vsub.f32 1.5, %v1237_v1 }
 0xb46   :  { %v1254_v9 = vadd.f32 %v1688_v6, %v1249_v55 }
 0xb47   :  { %v1239_v4 = vmul.f32 %v1732_v57, %v1238_v2 }
 0xb49   :  { %v1243_v5 = vsel %vm1242_vm6, %v1732_v57, %v1239_v4 }
 0xb4a   :  { %v1245_v7 = vmul.f32 %v1243_v5, %v1211_v42 }
 0xb4c   :  { %v1250_v8 = vmul.f32 %v1687_v10, %v1245_v7 }
 0xb4e   :  { %v1255_v11 = vadd.f32 %v1688_v6, %v1250_v8 }
 0xb50   :  { %v1256_v12 = vpack.c.bf16 %v1255_v11, %v1254_v9 }
 0xb52   :  { %1601 = vmatmul.msk.bf16.vlgmr.msra.gmra.mxu0 %vm62_vm0, %v1256_v12 }
 0xbcf   :  { %v1289_v22 = vpop.f32.mrf.mxu0 }
 0xbd0   :  { %v1290_v23 = vadd.f32 %v1689_v21, %v1289_v22 }
 0xbd2   :  { %v1296_v24 = vmul.f32 0.044715, %v1290_v23  ;;  %v1294_v35 = vmul.f32 0.5, %v1290_v23 }
 0xbd4   :  { %v1298_v26 = vmul.f32 %v1296_v24, %v1290_v23 }
 0xbd6   :  { %v1300_v27 = vmul.f32 %v1298_v26, %v1290_v23 }
 0xbd7   :  { %v1291_v28 = vpop.f32.mrf.mxu0 }
 0xbd8   :  { %v1302_v30 = vadd.f32 %v1300_v27, %v1290_v23  ;;  %v1292_v31 = vadd.f32 %v1689_v21, %v1291_v28 }
 0xbda   :  { %v1297_v32 = vmul.f32 0.044715, %v1292_v31  ;;  %v1304_v33 = vmul.f32 0.7978846, %v1302_v30  ;;  %v1295_v41 = vmul.f32 0.5, %v1292_v31 }
 0xbdc   :  { %v1299_v34 = vmul.f32 %v1297_v32, %v1292_v31  ;;  %1733 = vtanh.f32 %v1304_v33 }
 0xbde   :  { %v1301_v38 = vmul.f32 %v1299_v34, %v1292_v31 }
 0xbe0   :  { %v1303_v37 = vadd.f32 %v1301_v38, %v1292_v31 }
 0xbe2   :  { %v1305_v39 = vmul.f32 0.7978846, %v1303_v37  ;;  %v1734_v40 = vpop.eup %1733 }
 0xbe3   :  { %v1308_v58 = vadd.f32 1.0, %v1734_v40 }
 0xbe4   :  { %1735 = vtanh.f32 %v1305_v39 }
 0xbe5   :  { %v1310_v43 = vmul.f32 %v1308_v58, %v1294_v35 }
 0xbea   :  { %v1736_v59 = vpop.eup %1735 }
 0xbeb   :  { %v1309_v42 = vadd.f32 1.0, %v1736_v59 }
 0xbed   :  { %v1311_v62 = vmul.f32 %v1309_v42, %v1295_v41 }
 0xbef   :  { %v1312_v44 = vpack.c.bf16 %v1311_v62, %v1310_v43 }
 0xbf1   :  { %1389 = vmatmul.bf16.vlgmr.msrb.gmra.mxu1 %v1312_v44 }
 0xc6e   :  { %v1390_v46 = vpop.f32.mrf.mxu1 }
 0xc6f   :  { %v1391_v47 = vadd.f32 %v1690_v45, %v1390_v46 }
 0xc71   :  { %v1395_v48 = vadd.f32 %v1391_v47, %v2127_v29 }
 0xc73   :  { %1397 = vst.msk [vmem:[#allocation2] sm:$0xff] %vm62_vm0, %v1395_v48 }
 0xc76   :  { %v1392_v49 = vpop.f32.mrf.mxu1 }
 0xc77   :  { %v1393_v25 = vadd.f32 %v1690_v45, %v1392_v49 }
 0xc79   :  { %v1396_v50 = vadd.f32 %v1393_v25, %v2135_v36 }
 0xc7b   :  { %1398 = vst.msk [vmem:[#allocation2 + $0x8] sm:$0xff] %vm62_vm0, %v1396_v50 }
 0xc7c   :  { %1411 = dma.vmem_to_hbm [thread:$0]  %s1404_s10, 256, %s1406_s23, [#allocation3], %s1767_s16, %s1767_s16, %s1768_s13  }
 0xc7d   :  { %1763 = dma.done.wait [#allocation3], 256  }
 0xc7e   :  { %1764 = vsyncadd [#allocation3], 4294967040 }
 0xc7f   :  { %1416 = vsyncpa [#allocation3], 1 }

</bundles_post_ra>
